<compile_context>
chip_gen: v7x
topology: tpu7x:2x2x1
jax: 0.10.0
libtpu: 0.0.40
codegen_flags: <defaults>
</compile_context>

<pallas_src>
import math
import jax
import jax.numpy as jnp
from jax.experimental import pallas as pl
from jax.experimental.pallas import tpu as pltpu

# Small synthetic sizes consistent with the module (DistilBERT dim scaled down,
# n_layers=1, n_heads=3 as in Config).
B, L, D, H, HFF, V, NCLS = 4, 16, 48, 3, 96, 64, 2
DH = D // H
NB = 2                      # batch elements per grid step -> grid=(2,) for megacore
DPAD = 128                  # lane-dense padding of the hidden-state output
LN_EPS = 1e-12
NEG_BIG = -1e30             # finite "-inf" for masked_fill

# Row layout of the packed small-vector operand (LN weights/biases + linear biases).
VEC_W = 3 * D               # widest packed vector (fused QKV bias)
(ROW_EMB_LN_W, ROW_EMB_LN_B, ROW_SA_LN_W, ROW_SA_LN_B, ROW_OUT_LN_W, ROW_OUT_LN_B,
 ROW_BQKV, ROW_BO, ROW_B1, ROW_B2, ROW_BHEAD) = range(11)
NVEC = 11


def _layer_norm(x, w, b):
    mu = jnp.mean(x, axis=-1, keepdims=True)
    var = jnp.mean((x - mu) ** 2, axis=-1, keepdims=True)
    return (x - mu) * jax.lax.rsqrt(var + LN_EPS) * w + b


def _gelu(x):
    # TODO(synk): nn.GELU() is the exact erf form; tanh approximation used for robust TPU EUP lowering.
    c = math.sqrt(2.0 / math.pi)
    return 0.5 * x * (1.0 + jnp.tanh(c * (x + 0.044715 * x * x * x)))


def _linear(x, w, b):
    # torch F.linear: y = x @ w.T + b, w is (out_features, in_features)
    y = jax.lax.dot_general(x, w, (((1,), (1,)), ((), ())),
                            preferred_element_type=jnp.float32)
    return y + b


def _split_heads(x):
    # (L, D) -> (H, L, DH): gather head slices into a leading batch dim once,
    # so attention runs as a single batched contraction over heads.
    return jnp.stack([x[:, h * DH:(h + 1) * DH] for h in range(H)], axis=0)


def bert_kernel(ids_ref, mask_ref, onehot_ref,
                word_ref, pos_ref, vec_ref,
                wqkv_ref, wo_ref, w1_ref, w2_ref, whead_ref,
                hid_ref, logits_ref, nll_ref):
    """Embeddings (word+pos gather + LayerNorm) + one DistilBERT block + head + CE NLL.

    One grid step processes NB batch elements; all NB*L token rows are folded into the
    matmul M dimension. Dropout layers are identity (eval mode).
    """
    vec = vec_ref[...]                                            # (NVEC, VEC_W)

    # ---- Embeddings: one-hot word gather + position embeddings + LayerNorm ----
    ids = ids_ref[...]                                            # (NB, L, 1) int32
    iota_v = jax.lax.broadcasted_iota(jnp.int32, (NB, L, V), 2)
    onehot_ids = (ids == iota_v).astype(jnp.float32)              # (NB, L, V)
    word_e = jnp.dot(onehot_ids.reshape(NB * L, V), word_ref[...],
                     preferred_element_type=jnp.float32)          # (NB*L, D)
    pos_e = jnp.tile(pos_ref[...], (NB, 1))                       # (NB*L, D)
    h = _layer_norm(word_e + pos_e,
                    vec[ROW_EMB_LN_W:ROW_EMB_LN_W + 1, :D],
                    vec[ROW_EMB_LN_B:ROW_EMB_LN_B + 1, :D])

    # ---- multi-head self-attention (fused QKV projection) ----
    qkv = _linear(h, wqkv_ref[...], vec[ROW_BQKV:ROW_BQKV + 1, :3 * D])   # (NB*L, 3D)
    q = qkv[:, 0:D]
    k = qkv[:, D:2 * D]
    v = qkv[:, 2 * D:3 * D]

    inv_sqrt_dh = jnp.float32(1.0 / math.sqrt(DH))
    ctx_rows = []
    for b in range(NB):                                           # static unroll, NB=2
        rows = slice(b * L, (b + 1) * L)
        qh = _split_heads(q[rows]) * inv_sqrt_dh                  # (H, L, DH)
        kh = _split_heads(k[rows])
        vh = _split_heads(v[rows])
        s = jnp.einsum("hqd,hkd->hqk", qh, kh,
                       preferred_element_type=jnp.float32)        # (H, L, L)
        key_mask = mask_ref[b][None, :, :]                        # (1, 1, L), hoisted
        s = jnp.where(key_mask > 0.0, s, NEG_BIG)                 # masked_fill(mask==0)
        s = s - jnp.max(s, axis=-1, keepdims=True)
        p = jnp.exp(s)
        p = p * pl.reciprocal(jnp.sum(p, axis=-1, keepdims=True), approx=True)
        ctx = jnp.einsum("hqk,hkd->hqd", p, vh,
                         preferred_element_type=jnp.float32)      # (H, L, DH)
        ctx_rows.append(jnp.concatenate([ctx[hh] for hh in range(H)], axis=-1))  # (L, D)
    ctx = jnp.concatenate(ctx_rows, axis=0)                       # (NB*L, D) "unshape"

    attn_out = _linear(ctx, wo_ref[...], vec[ROW_BO:ROW_BO + 1, :D])
    sa = _layer_norm(attn_out + h,
                     vec[ROW_SA_LN_W:ROW_SA_LN_W + 1, :D],
                     vec[ROW_SA_LN_B:ROW_SA_LN_B + 1, :D])

    # ---- feed-forward ----
    f = _linear(sa, w1_ref[...], vec[ROW_B1:ROW_B1 + 1, :HFF])
    f = _gelu(f)
    f = _linear(f, w2_ref[...], vec[ROW_B2:ROW_B2 + 1, :D])
    out = _layer_norm(f + sa,
                      vec[ROW_OUT_LN_W:ROW_OUT_LN_W + 1, :D],
                      vec[ROW_OUT_LN_B:ROW_OUT_LN_B + 1, :D])     # (NB*L, D)

    # ---- lane-dense hidden-state output (zero-pad D -> DPAD) ----
    pad = jnp.zeros((NB * L, DPAD - D), jnp.float32)
    hid_ref[...] = jnp.concatenate([out, pad], axis=-1).reshape(NB, L, DPAD)

    # ---- fused classifier head + per-example CE NLL on the CLS rows ----
    cls = jnp.concatenate([out[b * L:b * L + 1] for b in range(NB)], axis=0)     # (NB, D)
    logits = _linear(cls, whead_ref[...], vec[ROW_BHEAD:ROW_BHEAD + 1, :NCLS])   # (NB, NCLS)
    m = jnp.max(logits, axis=-1, keepdims=True)
    lse = m + jnp.log(jnp.sum(jnp.exp(logits - m), axis=-1, keepdims=True))
    nll = lse - jnp.sum(logits * onehot_ref[0], axis=-1, keepdims=True)          # (NB, 1)
    logits_ref[...] = logits.reshape(1, NB, NCLS)
    nll_ref[...] = nll.reshape(1, NB, 1)


def run_model(ids3, mask3, onehot3, packed):
    in_specs = [
        pl.BlockSpec((NB, L, 1), lambda i: (i, 0, 0)),         # token ids
        pl.BlockSpec((NB, 1, L), lambda i: (i, 0, 0)),         # attention mask
        pl.BlockSpec((1, NB, NCLS), lambda i: (i, 0, 0)),      # one-hot labels
        pl.BlockSpec((V, D), lambda i: (0, 0)),                # word embedding table
        pl.BlockSpec((L, D), lambda i: (0, 0)),                # position embedding table
        pl.BlockSpec((NVEC, VEC_W), lambda i: (0, 0)),         # packed LN weights + biases
        pl.BlockSpec((3 * D, D), lambda i: (0, 0)),            # fused QKV weight
        pl.BlockSpec((D, D), lambda i: (0, 0)),                # attention output weight
        pl.BlockSpec((HFF, D), lambda i: (0, 0)),              # FFN lin1 weight
        pl.BlockSpec((D, HFF), lambda i: (0, 0)),              # FFN lin2 weight
        pl.BlockSpec((NCLS, D), lambda i: (0, 0)),             # pred_fc1 weight
    ]
    out_specs = (
        pl.BlockSpec((NB, L, DPAD), lambda i: (i, 0, 0)),
        pl.BlockSpec((1, NB, NCLS), lambda i: (i, 0, 0)),
        pl.BlockSpec((1, NB, 1), lambda i: (i, 0, 0)),
    )
    out_shape = (
        jax.ShapeDtypeStruct((B, L, DPAD), jnp.float32),
        jax.ShapeDtypeStruct((B // NB, NB, NCLS), jnp.float32),
        jax.ShapeDtypeStruct((B // NB, NB, 1), jnp.float32),
    )
    hid_pad, logits, nll = pl.pallas_call(
        bert_kernel,
        out_shape=out_shape,
        grid=(B // NB,),
        in_specs=in_specs,
        out_specs=out_specs,
        compiler_params=pltpu.CompilerParams(dimension_semantics=("parallel",)),
    )(ids3, mask3, onehot3,
      packed["word"], packed["pos"], packed["vec"],
      packed["wqkv"], packed["wo"], packed["w1"], packed["w2"], packed["whead"])

    hidden = hid_pad[:, :, :D]                 # drop the lane padding
    logits = logits.reshape(B, NCLS)
    loss = jnp.mean(nll)                       # CrossEntropyLoss(reduction='mean')
    return hidden, logits, loss


def init_params(key):
    ks = jax.random.split(key, 9)
    std = 0.02
    f32 = jnp.float32
    p = {}
    p["emb.word"] = jax.random.normal(ks[0], (V, D), f32) * std
    p["emb.pos"] = jax.random.normal(ks[1], (L, D), f32) * std
    p["emb.ln.w"] = jnp.ones((D,), f32)
    p["emb.ln.b"] = jnp.zeros((D,), f32)
    p["attn.q.w"] = jax.random.normal(ks[2], (D, D), f32) * std
    p["attn.k.w"] = jax.random.normal(ks[3], (D, D), f32) * std
    p["attn.v.w"] = jax.random.normal(ks[4], (D, D), f32) * std
    p["attn.qkv.b"] = jnp.zeros((3 * D,), f32)
    p["attn.out.w"] = jax.random.normal(ks[5], (D, D), f32) * std
    p["attn.out.b"] = jnp.zeros((D,), f32)
    p["sa_ln.w"] = jnp.ones((D,), f32)
    p["sa_ln.b"] = jnp.zeros((D,), f32)
    p["ffn.lin1.w"] = jax.random.normal(ks[6], (HFF, D), f32) * std
    p["ffn.lin1.b"] = jnp.zeros((HFF,), f32)
    p["ffn.lin2.w"] = jax.random.normal(ks[7], (D, HFF), f32) * std
    p["ffn.lin2.b"] = jnp.zeros((D,), f32)
    p["out_ln.w"] = jnp.ones((D,), f32)
    p["out_ln.b"] = jnp.zeros((D,), f32)
    # pred_fc1: normal(std=config.initializer_range=0.1) weight, zero bias
    p["pred_fc1.w"] = jax.random.normal(ks[8], (NCLS, D), f32) * 0.1
    p["pred_fc1.b"] = jnp.zeros((NCLS,), f32)
    return p


def pack_params(p):
    """Fuse the QKV weights and pack all 11 small vectors into one (NVEC, VEC_W) operand."""
    rows = [
        (ROW_EMB_LN_W, p["emb.ln.w"]), (ROW_EMB_LN_B, p["emb.ln.b"]),
        (ROW_SA_LN_W, p["sa_ln.w"]), (ROW_SA_LN_B, p["sa_ln.b"]),
        (ROW_OUT_LN_W, p["out_ln.w"]), (ROW_OUT_LN_B, p["out_ln.b"]),
        (ROW_BQKV, p["attn.qkv.b"]), (ROW_BO, p["attn.out.b"]),
        (ROW_B1, p["ffn.lin1.b"]), (ROW_B2, p["ffn.lin2.b"]),
        (ROW_BHEAD, p["pred_fc1.b"]),
    ]
    vec = jnp.zeros((NVEC, VEC_W), jnp.float32)
    for r, x in rows:
        vec = vec.at[r, :x.shape[0]].set(x)
    return {
        "word": p["emb.word"],
        "pos": p["emb.pos"],
        "vec": vec,
        "wqkv": jnp.concatenate([p["attn.q.w"], p["attn.k.w"], p["attn.v.w"]], axis=0),
        "wo": p["attn.out.w"],
        "w1": p["ffn.lin1.w"],
        "w2": p["ffn.lin2.w"],
        "whead": p["pred_fc1.w"],
    }


if __name__ == "__main__":
    key = jax.random.PRNGKey(0)
    kp, kid, klen, ky = jax.random.split(key, 4)
    params = init_params(kp)
    packed = pack_params(params)

    # TODO(synk): DistilBertTokenizer / process_data is host-side string processing;
    # we synthesize token ids + lengths directly.
    ids = jax.random.randint(kid, (B, L), 1, V)
    ids = ids.at[:, 0].set(2)                                     # [CLS]-like token id
    lens = jax.random.randint(klen, (B,), 4, L + 1)
    mask = (jnp.arange(L)[None, :] < lens[:, None]).astype(jnp.float32)   # (B, L)
    y = jax.random.randint(ky, (B,), 0, NCLS)

    ids3 = ids.astype(jnp.int32)[:, :, None]                      # (B, L, 1)
    mask3 = mask[:, None, :]                                      # (B, 1, L)
    onehot3 = jax.nn.one_hot(y, NCLS, dtype=jnp.float32).reshape(B // NB, NB, NCLS)

    hidden, logits, loss = run_model(ids3, mask3, onehot3, packed)

    pred = jnp.argmax(logits, axis=-1)
    acc_val = jnp.mean((pred == y).astype(jnp.float32))
    # TODO(synk): sklearn.metrics.f1_score (host-side macro-F1) not reproduced in-kernel.

    jax.block_until_ready((hidden, logits, loss, acc_val))
    print("KERNEL_OK")
</pallas_src>

<mosaic_0001>
module attributes {stable_mosaic.version = 11 : i64} {
  func.func @bert_kernel(%arg0: i32, %arg1: memref<2x16x1xi32, #tpu.memory_space<vmem>>, %arg2: memref<2x1x16xf32, #tpu.memory_space<vmem>>, %arg3: memref<1x2x2xf32, #tpu.memory_space<vmem>>, %arg4: memref<64x48xf32, #tpu.memory_space<vmem>>, %arg5: memref<16x48xf32, #tpu.memory_space<vmem>>, %arg6: memref<11x144xf32, #tpu.memory_space<vmem>>, %arg7: memref<144x48xf32, #tpu.memory_space<vmem>>, %arg8: memref<48x48xf32, #tpu.memory_space<vmem>>, %arg9: memref<96x48xf32, #tpu.memory_space<vmem>>, %arg10: memref<48x96xf32, #tpu.memory_space<vmem>>, %arg11: memref<2x48xf32, #tpu.memory_space<vmem>>, %arg12: memref<2x16x128xf32, #tpu.memory_space<vmem>>, %arg13: memref<1x2x2xf32, #tpu.memory_space<vmem>>, %arg14: memref<1x2x1xf32, #tpu.memory_space<vmem>>) attributes {dimension_semantics = [#tpu.dimension_semantics<parallel>], iteration_bounds = array<i64: 2>, scalar_prefetch = 0 : i64, scratch_operands = 0 : i64, tpu.core_type = #tpu.core_type<tc>, window_params = [{transform_indices = @transform_0, window_bounds = array<i64: 2, 16, 1>}, {transform_indices = @transform_1, window_bounds = array<i64: 2, 1, 16>}, {transform_indices = @transform_2, window_bounds = array<i64: 1, 2, 2>}, {pipeline_mode = #tpu.pipeline_mode<synchronous>, transform_indices = @transform_3, window_bounds = array<i64: 64, 48>}, {pipeline_mode = #tpu.pipeline_mode<synchronous>, transform_indices = @transform_4, window_bounds = array<i64: 16, 48>}, {pipeline_mode = #tpu.pipeline_mode<synchronous>, transform_indices = @transform_5, window_bounds = array<i64: 11, 144>}, {pipeline_mode = #tpu.pipeline_mode<synchronous>, transform_indices = @transform_6, window_bounds = array<i64: 144, 48>}, {pipeline_mode = #tpu.pipeline_mode<synchronous>, transform_indices = @transform_7, window_bounds = array<i64: 48, 48>}, {pipeline_mode = #tpu.pipeline_mode<synchronous>, transform_indices = @transform_8, window_bounds = array<i64: 96, 48>}, {pipeline_mode = #tpu.pipeline_mode<synchronous>, transform_indices = @transform_9, window_bounds = array<i64: 48, 96>}, {pipeline_mode = #tpu.pipeline_mode<synchronous>, transform_indices = @transform_10, window_bounds = array<i64: 2, 48>}, {transform_indices = @transform_11, window_bounds = array<i64: 2, 16, 128>}, {transform_indices = @transform_12, window_bounds = array<i64: 1, 2, 2>}, {transform_indices = @transform_13, window_bounds = array<i64: 1, 2, 1>}]} {
    %c0 = arith.constant 0 : index
    %c0_0 = arith.constant 0 : index
    %0 = vector.load %arg6[%c0, %c0_0] : memref<11x144xf32, #tpu.memory_space<vmem>>, vector<11x144xf32>
    %c0_1 = arith.constant 0 : index
    %c0_2 = arith.constant 0 : index
    %c0_3 = arith.constant 0 : index
    %1 = vector.load %arg1[%c0_1, %c0_2, %c0_3] : memref<2x16x1xi32, #tpu.memory_space<vmem>>, vector<2x16x1xi32>
    %2 = tpu.iota {dimensions = array<i32: 2>} : vector<2x16x64xi32>
    %3 = vector.broadcast %1 : vector<2x16x1xi32> to vector<2x16x64xi32>
    %4 = arith.cmpi eq, %3, %2 : vector<2x16x64xi32>
    %5 = arith.extui %4 : vector<2x16x64xi1> to vector<2x16x64xi32>
    %6 = arith.sitofp %5 : vector<2x16x64xi32> to vector<2x16x64xf32>
    %7 = vector.shape_cast %6 : vector<2x16x64xf32> to vector<32x64xf32>
    %c0_4 = arith.constant 0 : index
    %c0_5 = arith.constant 0 : index
    %8 = vector.load %arg4[%c0_4, %c0_5] : memref<64x48xf32, #tpu.memory_space<vmem>>, vector<64x48xf32>
    %cst = arith.constant dense<0.000000e+00> : vector<32x48xf32>
    %9 = tpu.matmul %7, %8, %cst {dimension_numbers = #tpu.dot_dimension_numbers<[1], [0], [0], [1], [0, 0, 1, 1], [], []>} : vector<32x64xf32>, vector<64x48xf32>, vector<32x48xf32> -> vector<32x48xf32>
    %c0_6 = arith.constant 0 : index
    %c0_7 = arith.constant 0 : index
    %10 = vector.load %arg5[%c0_6, %c0_7] : memref<16x48xf32, #tpu.memory_space<vmem>>, vector<16x48xf32>
    %11 = tpu.concatenate %10, %10 in 0 : vector<16x48xf32>, vector<16x48xf32> -> vector<32x48xf32>
    %12 = arith.addf %9, %11 : vector<32x48xf32>
    %13 = vector.extract_strided_slice %0 {offsets = [0, 0], sizes = [1, 48], strides = [1, 1]} : vector<11x144xf32> to vector<1x48xf32>
    %14 = vector.extract_strided_slice %0 {offsets = [1, 0], sizes = [1, 48], strides = [1, 1]} : vector<11x144xf32> to vector<1x48xf32>
    %cst_8 = arith.constant dense<0.000000e+00> : vector<32xf32>
    %15 = vector.multi_reduction <add>, %12, %cst_8 [1] : vector<32x48xf32> to vector<32xf32>
    %16 = vector.shape_cast %15 : vector<32xf32> to vector<32x1xf32>
    %cst_9 = arith.constant 4.800000e+01 : f32
    %17 = vector.broadcast %cst_9 : f32 to vector<32x1xf32>
    %18 = arith.divf %16, %17 : vector<32x1xf32>
    %19 = vector.broadcast %18 : vector<32x1xf32> to vector<32x48xf32>
    %20 = arith.subf %12, %19 : vector<32x48xf32>
    %21 = arith.mulf %20, %20 : vector<32x48xf32>
    %cst_10 = arith.constant dense<0.000000e+00> : vector<32xf32>
    %22 = vector.multi_reduction <add>, %21, %cst_10 [1] : vector<32x48xf32> to vector<32xf32>
    %23 = vector.shape_cast %22 : vector<32xf32> to vector<32x1xf32>
    %cst_11 = arith.constant 4.800000e+01 : f32
    %24 = vector.broadcast %cst_11 : f32 to vector<32x1xf32>
    %25 = arith.divf %23, %24 : vector<32x1xf32>
    %26 = vector.broadcast %18 : vector<32x1xf32> to vector<32x48xf32>
    %27 = arith.subf %12, %26 : vector<32x48xf32>
    %cst_12 = arith.constant 9.99999996E-13 : f32
    %28 = vector.broadcast %cst_12 : f32 to vector<32x1xf32>
    %29 = arith.addf %25, %28 : vector<32x1xf32>
    %30 = math.rsqrt %29 : vector<32x1xf32>
    %31 = vector.broadcast %30 : vector<32x1xf32> to vector<32x48xf32>
    %32 = arith.mulf %27, %31 : vector<32x48xf32>
    %33 = vector.broadcast %13 : vector<1x48xf32> to vector<32x48xf32>
    %34 = arith.mulf %32, %33 : vector<32x48xf32>
    %35 = vector.broadcast %14 : vector<1x48xf32> to vector<32x48xf32>
    %36 = arith.addf %34, %35 : vector<32x48xf32>
    %c0_13 = arith.constant 0 : index
    %c0_14 = arith.constant 0 : index
    %37 = vector.load %arg7[%c0_13, %c0_14] : memref<144x48xf32, #tpu.memory_space<vmem>>, vector<144x48xf32>
    %38 = vector.extract_strided_slice %0 {offsets = [6, 0], sizes = [1, 144], strides = [1, 1]} : vector<11x144xf32> to vector<1x144xf32>
    %cst_15 = arith.constant dense<0.000000e+00> : vector<32x144xf32>
    %39 = tpu.matmul %36, %37, %cst_15 {dimension_numbers = #tpu.dot_dimension_numbers<[1], [1], [0], [0], [0, 0, 1, 0], [], []>} : vector<32x48xf32>, vector<144x48xf32>, vector<32x144xf32> -> vector<32x144xf32>
    %40 = vector.broadcast %38 : vector<1x144xf32> to vector<32x144xf32>
    %41 = arith.addf %39, %40 : vector<32x144xf32>
    %42 = vector.extract_strided_slice %41 {offsets = [0, 0], sizes = [32, 48], strides = [1, 1]} : vector<32x144xf32> to vector<32x48xf32>
    %43 = vector.extract_strided_slice %41 {offsets = [0, 48], sizes = [32, 48], strides = [1, 1]} : vector<32x144xf32> to vector<32x48xf32>
    %44 = vector.extract_strided_slice %41 {offsets = [0, 96], sizes = [32, 48], strides = [1, 1]} : vector<32x144xf32> to vector<32x48xf32>
    %45 = vector.extract_strided_slice %42 {offsets = [0, 0], sizes = [16, 48], strides = [1, 1]} : vector<32x48xf32> to vector<16x48xf32>
    %46 = vector.extract_strided_slice %45 {offsets = [0, 0], sizes = [16, 16], strides = [1, 1]} : vector<16x48xf32> to vector<16x16xf32>
    %47 = vector.extract_strided_slice %45 {offsets = [0, 16], sizes = [16, 16], strides = [1, 1]} : vector<16x48xf32> to vector<16x16xf32>
    %48 = vector.extract_strided_slice %45 {offsets = [0, 32], sizes = [16, 16], strides = [1, 1]} : vector<16x48xf32> to vector<16x16xf32>
    %49 = vector.shape_cast %46 : vector<16x16xf32> to vector<1x16x16xf32>
    %50 = vector.shape_cast %47 : vector<16x16xf32> to vector<1x16x16xf32>
    %51 = vector.shape_cast %48 : vector<16x16xf32> to vector<1x16x16xf32>
    %52 = tpu.concatenate %49, %50, %51 in 0 : vector<1x16x16xf32>, vector<1x16x16xf32>, vector<1x16x16xf32> -> vector<3x16x16xf32>
    %cst_16 = arith.constant 2.500000e-01 : f32
    %53 = vector.broadcast %cst_16 : f32 to vector<3x16x16xf32>
    %54 = arith.mulf %52, %53 : vector<3x16x16xf32>
    %55 = vector.extract_strided_slice %43 {offsets = [0, 0], sizes = [16, 48], strides = [1, 1]} : vector<32x48xf32> to vector<16x48xf32>
    %56 = vector.extract_strided_slice %55 {offsets = [0, 0], sizes = [16, 16], strides = [1, 1]} : vector<16x48xf32> to vector<16x16xf32>
    %57 = vector.extract_strided_slice %55 {offsets = [0, 16], sizes = [16, 16], strides = [1, 1]} : vector<16x48xf32> to vector<16x16xf32>
    %58 = vector.extract_strided_slice %55 {offsets = [0, 32], sizes = [16, 16], strides = [1, 1]} : vector<16x48xf32> to vector<16x16xf32>
    %59 = vector.shape_cast %56 : vector<16x16xf32> to vector<1x16x16xf32>
    %60 = vector.shape_cast %57 : vector<16x16xf32> to vector<1x16x16xf32>
    %61 = vector.shape_cast %58 : vector<16x16xf32> to vector<1x16x16xf32>
    %62 = tpu.concatenate %59, %60, %61 in 0 : vector<1x16x16xf32>, vector<1x16x16xf32>, vector<1x16x16xf32> -> vector<3x16x16xf32>
    %63 = vector.extract_strided_slice %44 {offsets = [0, 0], sizes = [16, 48], strides = [1, 1]} : vector<32x48xf32> to vector<16x48xf32>
    %64 = vector.extract_strided_slice %63 {offsets = [0, 0], sizes = [16, 16], strides = [1, 1]} : vector<16x48xf32> to vector<16x16xf32>
    %65 = vector.extract_strided_slice %63 {offsets = [0, 16], sizes = [16, 16], strides = [1, 1]} : vector<16x48xf32> to vector<16x16xf32>
    %66 = vector.extract_strided_slice %63 {offsets = [0, 32], sizes = [16, 16], strides = [1, 1]} : vector<16x48xf32> to vector<16x16xf32>
    %67 = vector.shape_cast %64 : vector<16x16xf32> to vector<1x16x16xf32>
    %68 = vector.shape_cast %65 : vector<16x16xf32> to vector<1x16x16xf32>
    %69 = vector.shape_cast %66 : vector<16x16xf32> to vector<1x16x16xf32>
    %70 = tpu.concatenate %67, %68, %69 in 0 : vector<1x16x16xf32>, vector<1x16x16xf32>, vector<1x16x16xf32> -> vector<3x16x16xf32>
    "tpu.trace_start"() <{level = 10 : i32, message = "hqd,hkd->hqk"}> : () -> ()
    %cst_17 = arith.constant dense<0.000000e+00> : vector<3x16x16xf32>
    %71 = tpu.matmul %54, %62, %cst_17 {dimension_numbers = #tpu.dot_dimension_numbers<[2], [2], [1], [1], [0, 0, 0, 1, 1, 1], [0], [0]>} : vector<3x16x16xf32>, vector<3x16x16xf32>, vector<3x16x16xf32> -> vector<3x16x16xf32>
    "tpu.trace_stop"() : () -> ()
    %c0_18 = arith.constant 0 : index
    %c0_19 = arith.constant 0 : index
    %c0_20 = arith.constant 0 : index
    %72 = vector.load %arg2[%c0_18, %c0_19, %c0_20] : memref<2x1x16xf32, #tpu.memory_space<vmem>>, vector<1x1x16xf32>
    %73 = vector.shape_cast %72 : vector<1x1x16xf32> to vector<1x16xf32>
    %74 = vector.shape_cast %73 : vector<1x16xf32> to vector<1x1x16xf32>
    %cst_21 = arith.constant 0.000000e+00 : f32
    %75 = vector.broadcast %cst_21 : f32 to vector<1x1x16xf32>
    %76 = arith.cmpf ogt, %74, %75 : vector<1x1x16xf32>
    %cst_22 = arith.constant -1.000000e+30 : f32
    %77 = vector.shape_cast %76 : vector<1x1x16xi1> to vector<1x1x16xi1>
    %78 = vector.broadcast %77 : vector<1x1x16xi1> to vector<3x16x16xi1>
    %79 = vector.broadcast %cst_22 : f32 to vector<3x16x16xf32>
    %80 = arith.select %78, %71, %79 : vector<3x16x16xi1>, vector<3x16x16xf32>
    %cst_23 = arith.constant dense<0xFF800000> : vector<3x16xf32>
    %81 = vector.multi_reduction <maximumf>, %80, %cst_23 [2] : vector<3x16x16xf32> to vector<3x16xf32>
    %82 = vector.shape_cast %81 : vector<3x16xf32> to vector<3x16x1xf32>
    %83 = vector.broadcast %82 : vector<3x16x1xf32> to vector<3x16x16xf32>
    %84 = arith.subf %80, %83 : vector<3x16x16xf32>
    %85 = math.exp %84 : vector<3x16x16xf32>
    %cst_24 = arith.constant dense<0.000000e+00> : vector<3x16xf32>
    %86 = vector.multi_reduction <add>, %85, %cst_24 [2] : vector<3x16x16xf32> to vector<3x16xf32>
    %87 = vector.shape_cast %86 : vector<3x16xf32> to vector<3x16x1xf32>
    %88 = tpu.reciprocal %87 {approx = true} : vector<3x16x1xf32> -> vector<3x16x1xf32>
    %89 = vector.broadcast %88 : vector<3x16x1xf32> to vector<3x16x16xf32>
    %90 = arith.mulf %85, %89 : vector<3x16x16xf32>
    "tpu.trace_start"() <{level = 10 : i32, message = "hqk,hkd->hqd"}> : () -> ()
    %cst_25 = arith.constant dense<0.000000e+00> : vector<3x16x16xf32>
    %91 = tpu.matmul %90, %70, %cst_25 {dimension_numbers = #tpu.dot_dimension_numbers<[2], [1], [1], [2], [0, 0, 0, 1, 1, 2], [0], [0]>} : vector<3x16x16xf32>, vector<3x16x16xf32>, vector<3x16x16xf32> -> vector<3x16x16xf32>
    "tpu.trace_stop"() : () -> ()
    %92 = vector.extract_strided_slice %91 {offsets = [0, 0, 0], sizes = [1, 16, 16], strides = [1, 1, 1]} : vector<3x16x16xf32> to vector<1x16x16xf32>
    %93 = vector.shape_cast %92 : vector<1x16x16xf32> to vector<16x16xf32>
    %94 = vector.extract_strided_slice %91 {offsets = [1, 0, 0], sizes = [1, 16, 16], strides = [1, 1, 1]} : vector<3x16x16xf32> to vector<1x16x16xf32>
    %95 = vector.shape_cast %94 : vector<1x16x16xf32> to vector<16x16xf32>
    %96 = vector.extract_strided_slice %91 {offsets = [2, 0, 0], sizes = [1, 16, 16], strides = [1, 1, 1]} : vector<3x16x16xf32> to vector<1x16x16xf32>
    %97 = vector.shape_cast %96 : vector<1x16x16xf32> to vector<16x16xf32>
    %98 = tpu.concatenate %93, %95, %97 in 1 : vector<16x16xf32>, vector<16x16xf32>, vector<16x16xf32> -> vector<16x48xf32>
    %99 = vector.extract_strided_slice %42 {offsets = [16, 0], sizes = [16, 48], strides = [1, 1]} : vector<32x48xf32> to vector<16x48xf32>
    %100 = vector.extract_strided_slice %99 {offsets = [0, 0], sizes = [16, 16], strides = [1, 1]} : vector<16x48xf32> to vector<16x16xf32>
    %101 = vector.extract_strided_slice %99 {offsets = [0, 16], sizes = [16, 16], strides = [1, 1]} : vector<16x48xf32> to vector<16x16xf32>
    %102 = vector.extract_strided_slice %99 {offsets = [0, 32], sizes = [16, 16], strides = [1, 1]} : vector<16x48xf32> to vector<16x16xf32>
    %103 = vector.shape_cast %100 : vector<16x16xf32> to vector<1x16x16xf32>
    %104 = vector.shape_cast %101 : vector<16x16xf32> to vector<1x16x16xf32>
    %105 = vector.shape_cast %102 : vector<16x16xf32> to vector<1x16x16xf32>
    %106 = tpu.concatenate %103, %104, %105 in 0 : vector<1x16x16xf32>, vector<1x16x16xf32>, vector<1x16x16xf32> -> vector<3x16x16xf32>
    %cst_26 = arith.constant 2.500000e-01 : f32
    %107 = vector.broadcast %cst_26 : f32 to vector<3x16x16xf32>
    %108 = arith.mulf %106, %107 : vector<3x16x16xf32>
    %109 = vector.extract_strided_slice %43 {offsets = [16, 0], sizes = [16, 48], strides = [1, 1]} : vector<32x48xf32> to vector<16x48xf32>
    %110 = vector.extract_strided_slice %109 {offsets = [0, 0], sizes = [16, 16], strides = [1, 1]} : vector<16x48xf32> to vector<16x16xf32>
    %111 = vector.extract_strided_slice %109 {offsets = [0, 16], sizes = [16, 16], strides = [1, 1]} : vector<16x48xf32> to vector<16x16xf32>
    %112 = vector.extract_strided_slice %109 {offsets = [0, 32], sizes = [16, 16], strides = [1, 1]} : vector<16x48xf32> to vector<16x16xf32>
    %113 = vector.shape_cast %110 : vector<16x16xf32> to vector<1x16x16xf32>
    %114 = vector.shape_cast %111 : vector<16x16xf32> to vector<1x16x16xf32>
    %115 = vector.shape_cast %112 : vector<16x16xf32> to vector<1x16x16xf32>
    %116 = tpu.concatenate %113, %114, %115 in 0 : vector<1x16x16xf32>, vector<1x16x16xf32>, vector<1x16x16xf32> -> vector<3x16x16xf32>
    %117 = vector.extract_strided_slice %44 {offsets = [16, 0], sizes = [16, 48], strides = [1, 1]} : vector<32x48xf32> to vector<16x48xf32>
    %118 = vector.extract_strided_slice %117 {offsets = [0, 0], sizes = [16, 16], strides = [1, 1]} : vector<16x48xf32> to vector<16x16xf32>
    %119 = vector.extract_strided_slice %117 {offsets = [0, 16], sizes = [16, 16], strides = [1, 1]} : vector<16x48xf32> to vector<16x16xf32>
    %120 = vector.extract_strided_slice %117 {offsets = [0, 32], sizes = [16, 16], strides = [1, 1]} : vector<16x48xf32> to vector<16x16xf32>
    %121 = vector.shape_cast %118 : vector<16x16xf32> to vector<1x16x16xf32>
    %122 = vector.shape_cast %119 : vector<16x16xf32> to vector<1x16x16xf32>
    %123 = vector.shape_cast %120 : vector<16x16xf32> to vector<1x16x16xf32>
    %124 = tpu.concatenate %121, %122, %123 in 0 : vector<1x16x16xf32>, vector<1x16x16xf32>, vector<1x16x16xf32> -> vector<3x16x16xf32>
    "tpu.trace_start"() <{level = 10 : i32, message = "hqd,hkd->hqk"}> : () -> ()
    %cst_27 = arith.constant dense<0.000000e+00> : vector<3x16x16xf32>
    %125 = tpu.matmul %108, %116, %cst_27 {dimension_numbers = #tpu.dot_dimension_numbers<[2], [2], [1], [1], [0, 0, 0, 1, 1, 1], [0], [0]>} : vector<3x16x16xf32>, vector<3x16x16xf32>, vector<3x16x16xf32> -> vector<3x16x16xf32>
    "tpu.trace_stop"() : () -> ()
    %c1 = arith.constant 1 : index
    %c0_28 = arith.constant 0 : index
    %c0_29 = arith.constant 0 : index
    %126 = vector.load %arg2[%c1, %c0_28, %c0_29] : memref<2x1x16xf32, #tpu.memory_space<vmem>>, vector<1x1x16xf32>
    %127 = vector.shape_cast %126 : vector<1x1x16xf32> to vector<1x16xf32>
    %128 = vector.shape_cast %127 : vector<1x16xf32> to vector<1x1x16xf32>
    %cst_30 = arith.constant 0.000000e+00 : f32
    %129 = vector.broadcast %cst_30 : f32 to vector<1x1x16xf32>
    %130 = arith.cmpf ogt, %128, %129 : vector<1x1x16xf32>
    %cst_31 = arith.constant -1.000000e+30 : f32
    %131 = vector.shape_cast %130 : vector<1x1x16xi1> to vector<1x1x16xi1>
    %132 = vector.broadcast %131 : vector<1x1x16xi1> to vector<3x16x16xi1>
    %133 = vector.broadcast %cst_31 : f32 to vector<3x16x16xf32>
    %134 = arith.select %132, %125, %133 : vector<3x16x16xi1>, vector<3x16x16xf32>
    %cst_32 = arith.constant dense<0xFF800000> : vector<3x16xf32>
    %135 = vector.multi_reduction <maximumf>, %134, %cst_32 [2] : vector<3x16x16xf32> to vector<3x16xf32>
    %136 = vector.shape_cast %135 : vector<3x16xf32> to vector<3x16x1xf32>
    %137 = vector.broadcast %136 : vector<3x16x1xf32> to vector<3x16x16xf32>
    %138 = arith.subf %134, %137 : vector<3x16x16xf32>
    %139 = math.exp %138 : vector<3x16x16xf32>
    %cst_33 = arith.constant dense<0.000000e+00> : vector<3x16xf32>
    %140 = vector.multi_reduction <add>, %139, %cst_33 [2] : vector<3x16x16xf32> to vector<3x16xf32>
    %141 = vector.shape_cast %140 : vector<3x16xf32> to vector<3x16x1xf32>
    %142 = tpu.reciprocal %141 {approx = true} : vector<3x16x1xf32> -> vector<3x16x1xf32>
    %143 = vector.broadcast %142 : vector<3x16x1xf32> to vector<3x16x16xf32>
    %144 = arith.mulf %139, %143 : vector<3x16x16xf32>
    "tpu.trace_start"() <{level = 10 : i32, message = "hqk,hkd->hqd"}> : () -> ()
    %cst_34 = arith.constant dense<0.000000e+00> : vector<3x16x16xf32>
    %145 = tpu.matmul %144, %124, %cst_34 {dimension_numbers = #tpu.dot_dimension_numbers<[2], [1], [1], [2], [0, 0, 0, 1, 1, 2], [0], [0]>} : vector<3x16x16xf32>, vector<3x16x16xf32>, vector<3x16x16xf32> -> vector<3x16x16xf32>
    "tpu.trace_stop"() : () -> ()
    %146 = vector.extract_strided_slice %145 {offsets = [0, 0, 0], sizes = [1, 16, 16], strides = [1, 1, 1]} : vector<3x16x16xf32> to vector<1x16x16xf32>
    %147 = vector.shape_cast %146 : vector<1x16x16xf32> to vector<16x16xf32>
    %148 = vector.extract_strided_slice %145 {offsets = [1, 0, 0], sizes = [1, 16, 16], strides = [1, 1, 1]} : vector<3x16x16xf32> to vector<1x16x16xf32>
    %149 = vector.shape_cast %148 : vector<1x16x16xf32> to vector<16x16xf32>
    %150 = vector.extract_strided_slice %145 {offsets = [2, 0, 0], sizes = [1, 16, 16], strides = [1, 1, 1]} : vector<3x16x16xf32> to vector<1x16x16xf32>
    %151 = vector.shape_cast %150 : vector<1x16x16xf32> to vector<16x16xf32>
    %152 = tpu.concatenate %147, %149, %151 in 1 : vector<16x16xf32>, vector<16x16xf32>, vector<16x16xf32> -> vector<16x48xf32>
    %153 = tpu.concatenate %98, %152 in 0 : vector<16x48xf32>, vector<16x48xf32> -> vector<32x48xf32>
    %c0_35 = arith.constant 0 : index
    %c0_36 = arith.constant 0 : index
    %154 = vector.load %arg8[%c0_35, %c0_36] : memref<48x48xf32, #tpu.memory_space<vmem>>, vector<48x48xf32>
    %155 = vector.extract_strided_slice %0 {offsets = [7, 0], sizes = [1, 48], strides = [1, 1]} : vector<11x144xf32> to vector<1x48xf32>
    %cst_37 = arith.constant dense<0.000000e+00> : vector<32x48xf32>
    %156 = tpu.matmul %153, %154, %cst_37 {dimension_numbers = #tpu.dot_dimension_numbers<[1], [1], [0], [0], [0, 0, 1, 0], [], []>} : vector<32x48xf32>, vector<48x48xf32>, vector<32x48xf32> -> vector<32x48xf32>
    %157 = vector.broadcast %155 : vector<1x48xf32> to vector<32x48xf32>
    %158 = arith.addf %156, %157 : vector<32x48xf32>
    %159 = arith.addf %158, %36 : vector<32x48xf32>
    %160 = vector.extract_strided_slice %0 {offsets = [2, 0], sizes = [1, 48], strides = [1, 1]} : vector<11x144xf32> to vector<1x48xf32>
    %161 = vector.extract_strided_slice %0 {offsets = [3, 0], sizes = [1, 48], strides = [1, 1]} : vector<11x144xf32> to vector<1x48xf32>
    %cst_38 = arith.constant dense<0.000000e+00> : vector<32xf32>
    %162 = vector.multi_reduction <add>, %159, %cst_38 [1] : vector<32x48xf32> to vector<32xf32>
    %163 = vector.shape_cast %162 : vector<32xf32> to vector<32x1xf32>
    %cst_39 = arith.constant 4.800000e+01 : f32
    %164 = vector.broadcast %cst_39 : f32 to vector<32x1xf32>
    %165 = arith.divf %163, %164 : vector<32x1xf32>
    %166 = vector.broadcast %165 : vector<32x1xf32> to vector<32x48xf32>
    %167 = arith.subf %159, %166 : vector<32x48xf32>
    %168 = arith.mulf %167, %167 : vector<32x48xf32>
    %cst_40 = arith.constant dense<0.000000e+00> : vector<32xf32>
    %169 = vector.multi_reduction <add>, %168, %cst_40 [1] : vector<32x48xf32> to vector<32xf32>
    %170 = vector.shape_cast %169 : vector<32xf32> to vector<32x1xf32>
    %cst_41 = arith.constant 4.800000e+01 : f32
    %171 = vector.broadcast %cst_41 : f32 to vector<32x1xf32>
    %172 = arith.divf %170, %171 : vector<32x1xf32>
    %173 = vector.broadcast %165 : vector<32x1xf32> to vector<32x48xf32>
    %174 = arith.subf %159, %173 : vector<32x48xf32>
    %cst_42 = arith.constant 9.99999996E-13 : f32
    %175 = vector.broadcast %cst_42 : f32 to vector<32x1xf32>
    %176 = arith.addf %172, %175 : vector<32x1xf32>
    %177 = math.rsqrt %176 : vector<32x1xf32>
    %178 = vector.broadcast %177 : vector<32x1xf32> to vector<32x48xf32>
    %179 = arith.mulf %174, %178 : vector<32x48xf32>
    %180 = vector.broadcast %160 : vector<1x48xf32> to vector<32x48xf32>
    %181 = arith.mulf %179, %180 : vector<32x48xf32>
    %182 = vector.broadcast %161 : vector<1x48xf32> to vector<32x48xf32>
    %183 = arith.addf %181, %182 : vector<32x48xf32>
    %c0_43 = arith.constant 0 : index
    %c0_44 = arith.constant 0 : index
    %184 = vector.load %arg9[%c0_43, %c0_44] : memref<96x48xf32, #tpu.memory_space<vmem>>, vector<96x48xf32>
    %185 = vector.extract_strided_slice %0 {offsets = [8, 0], sizes = [1, 96], strides = [1, 1]} : vector<11x144xf32> to vector<1x96xf32>
    %cst_45 = arith.constant dense<0.000000e+00> : vector<32x96xf32>
    %186 = tpu.matmul %183, %184, %cst_45 {dimension_numbers = #tpu.dot_dimension_numbers<[1], [1], [0], [0], [0, 0, 1, 0], [], []>} : vector<32x48xf32>, vector<96x48xf32>, vector<32x96xf32> -> vector<32x96xf32>
    %187 = vector.broadcast %185 : vector<1x96xf32> to vector<32x96xf32>
    %188 = arith.addf %186, %187 : vector<32x96xf32>
    %cst_46 = arith.constant 5.000000e-01 : f32
    %189 = vector.broadcast %cst_46 : f32 to vector<32x96xf32>
    %190 = arith.mulf %189, %188 : vector<32x96xf32>
    %cst_47 = arith.constant 4.471500e-02 : f32
    %191 = vector.broadcast %cst_47 : f32 to vector<32x96xf32>
    %192 = arith.mulf %191, %188 : vector<32x96xf32>
    %193 = arith.mulf %192, %188 : vector<32x96xf32>
    %194 = arith.mulf %193, %188 : vector<32x96xf32>
    %195 = arith.addf %188, %194 : vector<32x96xf32>
    %cst_48 = arith.constant 0.797884583 : f32
    %196 = vector.broadcast %cst_48 : f32 to vector<32x96xf32>
    %197 = arith.mulf %196, %195 : vector<32x96xf32>
    %198 = math.tanh %197 : vector<32x96xf32>
    %cst_49 = arith.constant 1.000000e+00 : f32
    %199 = vector.broadcast %cst_49 : f32 to vector<32x96xf32>
    %200 = arith.addf %199, %198 : vector<32x96xf32>
    %201 = arith.mulf %190, %200 : vector<32x96xf32>
    %c0_50 = arith.constant 0 : index
    %c0_51 = arith.constant 0 : index
    %202 = vector.load %arg10[%c0_50, %c0_51] : memref<48x96xf32, #tpu.memory_space<vmem>>, vector<48x96xf32>
    %203 = vector.extract_strided_slice %0 {offsets = [9, 0], sizes = [1, 48], strides = [1, 1]} : vector<11x144xf32> to vector<1x48xf32>
    %cst_52 = arith.constant dense<0.000000e+00> : vector<32x48xf32>
    %204 = tpu.matmul %201, %202, %cst_52 {dimension_numbers = #tpu.dot_dimension_numbers<[1], [1], [0], [0], [0, 0, 1, 0], [], []>} : vector<32x96xf32>, vector<48x96xf32>, vector<32x48xf32> -> vector<32x48xf32>
    %205 = vector.broadcast %203 : vector<1x48xf32> to vector<32x48xf32>
    %206 = arith.addf %204, %205 : vector<32x48xf32>
    %207 = arith.addf %206, %183 : vector<32x48xf32>
    %208 = vector.extract_strided_slice %0 {offsets = [4, 0], sizes = [1, 48], strides = [1, 1]} : vector<11x144xf32> to vector<1x48xf32>
    %209 = vector.extract_strided_slice %0 {offsets = [5, 0], sizes = [1, 48], strides = [1, 1]} : vector<11x144xf32> to vector<1x48xf32>
    %cst_53 = arith.constant dense<0.000000e+00> : vector<32xf32>
    %210 = vector.multi_reduction <add>, %207, %cst_53 [1] : vector<32x48xf32> to vector<32xf32>
    %211 = vector.shape_cast %210 : vector<32xf32> to vector<32x1xf32>
    %cst_54 = arith.constant 4.800000e+01 : f32
    %212 = vector.broadcast %cst_54 : f32 to vector<32x1xf32>
    %213 = arith.divf %211, %212 : vector<32x1xf32>
    %214 = vector.broadcast %213 : vector<32x1xf32> to vector<32x48xf32>
    %215 = arith.subf %207, %214 : vector<32x48xf32>
    %216 = arith.mulf %215, %215 : vector<32x48xf32>
    %cst_55 = arith.constant dense<0.000000e+00> : vector<32xf32>
    %217 = vector.multi_reduction <add>, %216, %cst_55 [1] : vector<32x48xf32> to vector<32xf32>
    %218 = vector.shape_cast %217 : vector<32xf32> to vector<32x1xf32>
    %cst_56 = arith.constant 4.800000e+01 : f32
    %219 = vector.broadcast %cst_56 : f32 to vector<32x1xf32>
    %220 = arith.divf %218, %219 : vector<32x1xf32>
    %221 = vector.broadcast %213 : vector<32x1xf32> to vector<32x48xf32>
    %222 = arith.subf %207, %221 : vector<32x48xf32>
    %cst_57 = arith.constant 9.99999996E-13 : f32
    %223 = vector.broadcast %cst_57 : f32 to vector<32x1xf32>
    %224 = arith.addf %220, %223 : vector<32x1xf32>
    %225 = math.rsqrt %224 : vector<32x1xf32>
    %226 = vector.broadcast %225 : vector<32x1xf32> to vector<32x48xf32>
    %227 = arith.mulf %222, %226 : vector<32x48xf32>
    %228 = vector.broadcast %208 : vector<1x48xf32> to vector<32x48xf32>
    %229 = arith.mulf %227, %228 : vector<32x48xf32>
    %230 = vector.broadcast %209 : vector<1x48xf32> to vector<32x48xf32>
    %231 = arith.addf %229, %230 : vector<32x48xf32>
    %cst_58 = arith.constant 0.000000e+00 : f32
    %232 = vector.broadcast %cst_58 : f32 to vector<32x80xf32>
    %233 = tpu.concatenate %231, %232 in 1 : vector<32x48xf32>, vector<32x80xf32> -> vector<32x128xf32>
    %234 = vector.shape_cast %233 : vector<32x128xf32> to vector<2x16x128xf32>
    %c0_59 = arith.constant 0 : index
    %c0_60 = arith.constant 0 : index
    %c0_61 = arith.constant 0 : index
    %235 = vector.load %arg12[%c0_59, %c0_60, %c0_61] : memref<2x16x128xf32, #tpu.memory_space<vmem>>, vector<2x16x128xf32>
    tpu.vector_store %arg12[%c0_59, %c0_60, %c0_61], %234 {strides = array<i32>} : memref<2x16x128xf32, #tpu.memory_space<vmem>>, vector<2x16x128xf32>,
    %236 = vector.extract_strided_slice %231 {offsets = [0, 0], sizes = [1, 48], strides = [1, 1]} : vector<32x48xf32> to vector<1x48xf32>
    %237 = vector.extract_strided_slice %231 {offsets = [16, 0], sizes = [1, 48], strides = [1, 1]} : vector<32x48xf32> to vector<1x48xf32>
    %238 = tpu.concatenate %236, %237 in 0 : vector<1x48xf32>, vector<1x48xf32> -> vector<2x48xf32>
    %c0_62 = arith.constant 0 : index
    %c0_63 = arith.constant 0 : index
    %239 = vector.load %arg11[%c0_62, %c0_63] : memref<2x48xf32, #tpu.memory_space<vmem>>, vector<2x48xf32>
    %240 = vector.extract_strided_slice %0 {offsets = [10, 0], sizes = [1, 2], strides = [1, 1]} : vector<11x144xf32> to vector<1x2xf32>
    %cst_64 = arith.constant dense<0.000000e+00> : vector<2x2xf32>
    %241 = tpu.matmul %238, %239, %cst_64 {dimension_numbers = #tpu.dot_dimension_numbers<[1], [1], [0], [0], [0, 0, 1, 0], [], []>} : vector<2x48xf32>, vector<2x48xf32>, vector<2x2xf32> -> vector<2x2xf32>
    %242 = vector.broadcast %240 : vector<1x2xf32> to vector<2x2xf32>
    %243 = arith.addf %241, %242 : vector<2x2xf32>
    %cst_65 = arith.constant dense<0xFF800000> : vector<2xf32>
    %244 = vector.multi_reduction <maximumf>, %243, %cst_65 [1] : vector<2x2xf32> to vector<2xf32>
    %245 = vector.shape_cast %244 : vector<2xf32> to vector<2x1xf32>
    %246 = vector.broadcast %245 : vector<2x1xf32> to vector<2x2xf32>
    %247 = arith.subf %243, %246 : vector<2x2xf32>
    %248 = math.exp %247 : vector<2x2xf32>
    %cst_66 = arith.constant dense<0.000000e+00> : vector<2xf32>
    %249 = vector.multi_reduction <add>, %248, %cst_66 [1] : vector<2x2xf32> to vector<2xf32>
    %250 = vector.shape_cast %249 : vector<2xf32> to vector<2x1xf32>
    %251 = math.log %250 : vector<2x1xf32>
    %252 = arith.addf %245, %251 : vector<2x1xf32>
    %c0_67 = arith.constant 0 : index
    %c0_68 = arith.constant 0 : index
    %c0_69 = arith.constant 0 : index
    %253 = vector.load %arg3[%c0_67, %c0_68, %c0_69] : memref<1x2x2xf32, #tpu.memory_space<vmem>>, vector<1x2x2xf32>
    %254 = vector.shape_cast %253 : vector<1x2x2xf32> to vector<2x2xf32>
    %255 = arith.mulf %243, %254 : vector<2x2xf32>
    %cst_70 = arith.constant dense<0.000000e+00> : vector<2xf32>
    %256 = vector.multi_reduction <add>, %255, %cst_70 [1] : vector<2x2xf32> to vector<2xf32>
    %257 = vector.shape_cast %256 : vector<2xf32> to vector<2x1xf32>
    %258 = arith.subf %252, %257 : vector<2x1xf32>
    %259 = vector.shape_cast %243 : vector<2x2xf32> to vector<1x2x2xf32>
    %c0_71 = arith.constant 0 : index
    %c0_72 = arith.constant 0 : index
    %c0_73 = arith.constant 0 : index
    %260 = vector.load %arg13[%c0_71, %c0_72, %c0_73] : memref<1x2x2xf32, #tpu.memory_space<vmem>>, vector<1x2x2xf32>
    tpu.vector_store %arg13[%c0_71, %c0_72, %c0_73], %259 {strides = array<i32>} : memref<1x2x2xf32, #tpu.memory_space<vmem>>, vector<1x2x2xf32>,
    %261 = vector.shape_cast %258 : vector<2x1xf32> to vector<1x2x1xf32>
    %c0_74 = arith.constant 0 : index
    %c0_75 = arith.constant 0 : index
    %c0_76 = arith.constant 0 : index
    %262 = vector.load %arg14[%c0_74, %c0_75, %c0_76] : memref<1x2x1xf32, #tpu.memory_space<vmem>>, vector<1x2x1xf32>
    tpu.vector_store %arg14[%c0_74, %c0_75, %c0_76], %261 {strides = array<i32>} : memref<1x2x1xf32, #tpu.memory_space<vmem>>, vector<1x2x1xf32>,
    return
  }
  func.func @transform_0(%arg0: i32) -> (i32, i32, i32) {
    %c0_i32 = arith.constant 0 : i32
    %c0_i32_0 = arith.constant 0 : i32
    %c0_i32_1 = arith.constant 0 : i32
    return %arg0, %c0_i32, %c0_i32_0 : i32, i32, i32
  }
  func.func @transform_1(%arg0: i32) -> (i32, i32, i32) {
    %c0_i32 = arith.constant 0 : i32
    %c0_i32_0 = arith.constant 0 : i32
    %c0_i32_1 = arith.constant 0 : i32
    return %arg0, %c0_i32, %c0_i32_0 : i32, i32, i32
  }
  func.func @transform_2(%arg0: i32) -> (i32, i32, i32) {
    %c0_i32 = arith.constant 0 : i32
    %c0_i32_0 = arith.constant 0 : i32
    %c0_i32_1 = arith.constant 0 : i32
    return %arg0, %c0_i32, %c0_i32_0 : i32, i32, i32
  }
  func.func @transform_3(%arg0: i32) -> (i32, i32) {
    %c0_i32 = arith.constant 0 : i32
    %c0_i32_0 = arith.constant 0 : i32
    %c0_i32_1 = arith.constant 0 : i32
    return %c0_i32, %c0_i32_0 : i32, i32
  }
  func.func @transform_4(%arg0: i32) -> (i32, i32) {
    %c0_i32 = arith.constant 0 : i32
    %c0_i32_0 = arith.constant 0 : i32
    %c0_i32_1 = arith.constant 0 : i32
    return %c0_i32, %c0_i32_0 : i32, i32
  }
  func.func @transform_5(%arg0: i32) -> (i32, i32) {
    %c0_i32 = arith.constant 0 : i32
    %c0_i32_0 = arith.constant 0 : i32
    %c0_i32_1 = arith.constant 0 : i32
    return %c0_i32, %c0_i32_0 : i32, i32
  }
  func.func @transform_6(%arg0: i32) -> (i32, i32) {
    %c0_i32 = arith.constant 0 : i32
    %c0_i32_0 = arith.constant 0 : i32
    %c0_i32_1 = arith.constant 0 : i32
    return %c0_i32, %c0_i32_0 : i32, i32
  }
  func.func @transform_7(%arg0: i32) -> (i32, i32) {
    %c0_i32 = arith.constant 0 : i32
    %c0_i32_0 = arith.constant 0 : i32
    %c0_i32_1 = arith.constant 0 : i32
    return %c0_i32, %c0_i32_0 : i32, i32
  }
  func.func @transform_8(%arg0: i32) -> (i32, i32) {
    %c0_i32 = arith.constant 0 : i32
    %c0_i32_0 = arith.constant 0 : i32
    %c0_i32_1 = arith.constant 0 : i32
    return %c0_i32, %c0_i32_0 : i32, i32
  }
  func.func @transform_9(%arg0: i32) -> (i32, i32) {
    %c0_i32 = arith.constant 0 : i32
    %c0_i32_0 = arith.constant 0 : i32
    %c0_i32_1 = arith.constant 0 : i32
    return %c0_i32, %c0_i32_0 : i32, i32
  }
  func.func @transform_10(%arg0: i32) -> (i32, i32) {
    %c0_i32 = arith.constant 0 : i32
    %c0_i32_0 = arith.constant 0 : i32
    %c0_i32_1 = arith.constant 0 : i32
    return %c0_i32, %c0_i32_0 : i32, i32
  }
  func.func @transform_11(%arg0: i32) -> (i32, i32, i32) {
    %c0_i32 = arith.constant 0 : i32
    %c0_i32_0 = arith.constant 0 : i32
    %c0_i32_1 = arith.constant 0 : i32
    return %arg0, %c0_i32, %c0_i32_0 : i32, i32, i32
  }
  func.func @transform_12(%arg0: i32) -> (i32, i32, i32) {
    %c0_i32 = arith.constant 0 : i32
    %c0_i32_0 = arith.constant 0 : i32
    %c0_i32_1 = arith.constant 0 : i32
    return %arg0, %c0_i32, %c0_i32_0 : i32, i32, i32
  }
  func.func @transform_13(%arg0: i32) -> (i32, i32, i32) {
    %c0_i32 = arith.constant 0 : i32
    %c0_i32_0 = arith.constant 0 : i32
    %c0_i32_1 = arith.constant 0 : i32
    return %arg0, %c0_i32, %c0_i32_0 : i32, i32, i32
  }
}

</mosaic_0001>

<bundles_post_ra>
// kernel: tpu_custom_call.1
= control target key start
LH: loop header
LB: loop body
LE: loop exit
PB: predicated region body
PF: predicated region fallthrough
CT: control target
= control target key end

     0   :  { %s4930_s0 = inlined_call_operand.vmem [shape: s32[4,16,1], index: 0, kind: input, shape index: {}]   ;;  %s4931_s1 = inlined_call_operand.vmem [shape: f32[4,1,16], index: 1, kind: input, shape index: {}]   ;;  %s4932_s2 = inlined_call_operand.vmem [shape: f32[2,2,2], index: 2, kind: input, shape index: {}]   ;;  %s4933_s3 = inlined_call_operand.vmem [shape: f32[64,48], index: 3, kind: input, shape index: {}]   ;;  %s4934_s4 = inlined_call_operand.vmem [shape: f32[16,48], index: 4, kind: input, shape index: {}]   ;;  %s4935_s5 = inlined_call_operand.vmem [shape: f32[11,144], index: 5, kind: input, shape index: {}]   ;;  %s4936_s6 = inlined_call_operand.vmem [shape: f32[144,48], index: 6, kind: input, shape index: {}]   ;;  %s4937_s7 = inlined_call_operand.vmem [shape: f32[48,48], index: 7, kind: input, shape index: {}]   ;;  %s4938_s8 = inlined_call_operand.vmem [shape: f32[96,48], index: 8, kind: input, shape index: {}]   ;;  %s4939_s9 = inlined_call_operand.vmem [shape: f32[48,96], index: 9, kind: input, shape index: {}]   ;;  %s4940_s10 = inlined_call_operand.vmem [shape: f32[2,48], index: 10, kind: input, shape index: {}]   ;;  %s4941_s11 = inlined_call_operand.hbm [shape: f32[4,16,128], index: 11, kind: output, shape index: {0}]   ;;  %s4942_s12 = inlined_call_operand.hbm [shape: f32[2,2,2], index: 12, kind: output, shape index: {1}]   ;;  %s4943_s13 = inlined_call_operand.vmem [shape: f32[2,2,1], index: 13, kind: output, shape index: {2}]  }
   0x1   :  { %4945 = sst [smem:[#allocation9_spill]] %s4930_s0 }
   0x2   :  { %4946 = sst [smem:[#allocation10_spill]] %s4931_s1 }
   0x3   :  { %4947 = sst [smem:[#allocation11_spill]] %s4932_s2 }
   0x4   :  { %4948 = sst [smem:[#allocation12_spill]] %s4933_s3 }
   0x5   :  { %4949 = sst [smem:[#allocation13_spill]] %s4934_s4 }
   0x6   :  { %19 = vsyncpa [#allocation3], 0 }
   0x7   :  { %21 = vsyncpa [#allocation3 + $0x1], 0 }
   0x8   :  { %22 = vsyncpa [#allocation5], 0 }
   0x9   :  { %24 = vsyncpa [#allocation5 + $0x1], 0  ;;  %s4058_s25 = smov 0   ;;  %s4060_s26 = smov 0  }
   0xa   :  { %s4062_s27 = smov 0   ;;  %s4064_s28 = smov 0  }
   0xb LB: > { %s4079_s29 = sadd.s32 4294967295, %s3973_s28   ;;  %s3080_s30 = sadd.s32 4294967294, %s3973_s28   ;;  %s3973_s28 = sphi %s4064_s28, %s4971_s28   ;;  %s3969_s27 = sphi %s4062_s27, %s4970_s27   ;;  %s3965_s26 = sphi %s4060_s26, %s4969_s26   ;;  %s3961_s25 = sphi %s4058_s25, %s4968_s25  }
   0xc   : > { %s4083_s14 = sadd.s32 1, %s3973_s28   ;;  %s283_s15 = sadd.s32 1, %s3969_s27 }
   0xd   : > { %s280_s16 = ssub.s32 %s3973_s28, %s4083_s14  ;;  %p293_p0 = scmp.ne.s32.totalorder %s3969_s27, %s3965_s26 }
   0xe   : > { %p281_p1 = scmp.eq.s32.totalorder %s280_s16, 0  ;;  %p294_p2 = scmp.eq.s32.totalorder %s4079_s29, 1 }
   0xf   : > { %p299_p3 = scmp.ne.s32.totalorder %s3965_s26, %s3961_s25  ;;  %p300_p4 = scmp.eq.s32.totalorder %s3080_s30, 1 }
  0x10   : > { %s4094_s17 = scalar_select %p281_p1, %s3969_s27, %s283_s15  }
  0x11   : > { %p4096_p5 = por %p294_p2, %p293_p0  ;;  %p4100_p6 = por %p300_p4, %p299_p3 }
  0x12   : > { %4950 = sst [smem:[#allocation8_spill]] %s4094_s17  ;;  %p3083_p7 = scmp.ge.s32.totalorder %s3973_s28, 1 }
  0x13   : > { %p419_p8 = scmp.lt.s32.totalorder %s3973_s28, 3 }
  0x15   : > { %p420_p9 = pnand %p3083_p7, %p419_p8 }
  0x16   : > { %s3086_s20 = sshll.u32 (!%p420_p9), %s4079_s29, 1  ;;  %s4953_s3 = sld [smem:[#allocation12_spill]] (!%p420_p9)  ;;  %v3975_v3 = vmov (!%p420_p9), 0   ;;  %v3976_v15 = vmov (!%p420_p9), 0.0   ;;  %v509_v16 = vlaneseq (!%p420_p9)  ;;  %vm545_vm0 = vcmask (!%p420_p9), 523264   ;;  %v713_v30 = vld [vmem:[%s4936_s6] sm:$0xff] (!%p420_p9) }
  0x17   : > { %423 = sbr.rel (%p420_p9) target bundleno = 4484 (0x1184), region = 64  ;;  %3722 = vset.pattern.permute.xlu0 (!%p420_p9), %v3975_v3  ;;  %p482_p10 = scmp.lt.s32.totalorder (!%p420_p9), %s3086_s20, 3  ;;  %3723 = vset.pattern.permute.xlu1 (!%p420_p9), %v3975_v3  ;;  %vm643_vm3 = vcmask (!%p420_p9), 392192   ;;  %v714_v31 = vld [vmem:[%s4936_s6 + $0x8] sm:$0xff] (!%p420_p9)  ;;  %v3977_v33 = vmov (!%p420_p9), 0.0|0.0   ;;  %v715_v35 = vld [vmem:[%s4936_s6 + $0x10] sm:$0xff] (!%p420_p9) }
  0x18   : > { %s4954_s0 = sld [smem:[#allocation9_spill]] (!%p420_p9)  ;;  %869 = vmatprep.mubr.f32.mxu1 (!%p420_p9), %v3976_v15  ;;  %v4145_v17 = vand.u32 (!%p420_p9), 127, %v509_v16  ;;  %s4955_s4 = sld [smem:[#allocation13_spill]] (!%p420_p9)  ;;  %vm4175_vm4 = vmpackc.low (!%p420_p9), %vm643_vm3, %vm643_vm3  ;;  %3499 = vmatprep.subr.bf16.mxu1 (!%p420_p9), %v3977_v33  ;;  %v3500_v34 = vpack.c.bf16 (!%p420_p9), %v714_v31, %v713_v30  ;;  %v716_v36 = vld [vmem:[%s4936_s6 + $0x18] sm:$0xff] (!%p420_p9)  ;;  %v717_v38 = vld [vmem:[%s4936_s6 + $0x20] sm:$0xff] (!%p420_p9)  ;;  %vm924_vm7 = vcmask (!%p420_p9), 130048  }
  0x19   : > { %v3504_v37 = vpack.c.bf16 (!%p420_p9), %v716_v36, %v715_v35  ;;  %v718_v39 = vld [vmem:[%s4936_s6 + $0x28] sm:$0xff] (!%p420_p9)  ;;  %v719_v41 = vld [vmem:[%s4936_s6 + $0x30] sm:$0xff] (!%p420_p9)  ;;  %v720_v42 = vld [vmem:[%s4936_s6 + $0x38] sm:$0xff] (!%p420_p9)  ;;  %s3978_s22 = smov (!%p420_p9), 96   ;;  %s3980_s23 = smov (!%p420_p9), 80   ;;  %vm1547_vm13 = vcmask (!%p420_p9), 261120  }
  0x1a   : > { %3502 = vmatpush1.bf16.xpose.msk.msra.mxu1 (!%p420_p9), %vm4175_vm4, %v3500_v34  ;;  %v3508_v40 = vpack.c.bf16 (!%p420_p9), %v718_v39, %v717_v38  ;;  %v3512_v43 = vpack.c.bf16 (!%p420_p9), %v720_v42, %v719_v41  ;;  %v721_v44 = vld [vmem:[%s4936_s6 + $0x40] sm:$0xff] (!%p420_p9)  ;;  %v722_v45 = vld [vmem:[%s4936_s6 + $0x48] sm:$0xff] (!%p420_p9)  ;;  %v723_v47 = vld [vmem:[%s4936_s6 + $0x50] sm:$0xff] (!%p420_p9)  ;;  %s4960_s1 = sld [smem:[#allocation10_spill]] (!%p420_p9)  ;;  %vm2597_vm14 = vcmask (!%p420_p9), 785408   ;;  %p493_p11 = scmp.lt.s32.totalorder (!%p420_p9), %s4079_s29, 1 }
  0x1b   : > { %3503 = vmatprep.subr.bf16.mxu1 (!%p420_p9), %v3977_v33  ;;  %v3516_v46 = vpack.c.bf16 (!%p420_p9), %v722_v45, %v721_v44  ;;  %v724_v48 = vld [vmem:[%s4936_s6 + $0x58] sm:$0xff] (!%p420_p9)  ;;  %v725_v50 = vld [vmem:[%s4936_s6 + $0x60] sm:$0xff] (!%p420_p9)  ;;  %v726_v51 = vld [vmem:[%s4936_s6 + $0x68] sm:$0xff] (!%p420_p9)  ;;  %s4965_s2 = sld [smem:[#allocation11_spill]] (!%p420_p9) }
  0x1c   : > { %v535_v0 = vld [vmem:[%s4953_s3] sm:$0xff] (!%p420_p9)  ;;  %v536_v1 = vld [vmem:[%s4953_s3 + $0x8] sm:$0xff] (!%p420_p9)  ;;  %v537_v2 = vld [vmem:[%s4953_s3 + $0x10] sm:$0xff] (!%p420_p9)  ;;  %v3520_v49 = vpack.c.bf16 (!%p420_p9), %v724_v48, %v723_v47  ;;  %v3524_v52 = vpack.c.bf16 (!%p420_p9), %v726_v51, %v725_v50 }
  0x1d   : > { %v3483_v4 = vpack.c.bf16 (!%p420_p9), %v536_v1, %v535_v0  ;;  %v538_v5 = vld [vmem:[%s4953_s3 + $0x18] sm:$0xff] (!%p420_p9)  ;;  %v539_v7 = vld [vmem:[%s4953_s3 + $0x20] sm:$0xff] (!%p420_p9)  ;;  %v540_v8 = vld [vmem:[%s4953_s3 + $0x28] sm:$0xff] (!%p420_p9) }
  0x1e   : > { %v3487_v6 = vpack.c.bf16 %v538_v5, %v537_v2  ;;  %s4973_s20 = smov (!%p482_p10, %s3086_s20), 3  ;;  %v3491_v9 = vpack.c.bf16 %v540_v8, %v539_v7  ;;  %v541_v11 = vld [vmem:[%s4953_s3 + $0x30] sm:$0xff]  ;;  %v542_v12 = vld [vmem:[%s4953_s3 + $0x38] sm:$0xff]  ;;  %v4156_v22 = vld [vmem:[%s4955_s4] sm:$0xff] }
  0x1f   : > { %3484 = vmatprep.subr.bf16.mxu0 %v3483_v4  ;;  %s3205_s30 = sshll.u32 %s4973_s20, 4  ;;  %v3495_v14 = vpack.c.bf16 %v542_v12, %v541_v11  ;;  %v4161_v24 = vld [vmem:[%s4955_s4 + $0x8] sm:$0xff]  ;;  %v727_v63 = vld [vmem:[%s4936_s6 + $0x70] sm:$0xff]  ;;  %v728_v0 = vld [vmem:[%s4936_s6 + $0x78] sm:$0xff] }
  0x20   : > { %3486 = vmatpush3.bf16.msra.mxu0 %v3483_v4  ;;  %s4133_s16 = scalar_lea.vmem %s4954_s0, %s3205_s30  ;;  %v3528_v2 = vpack.c.bf16 %v728_v0, %v727_v63  ;;  %v729_v5 = vld [vmem:[%s4936_s6 + $0x80] sm:$0xff]  ;;  %s3979_s0 = smov 112   ;;  %vm4330_vm8 = vmpackc.low %vm924_vm7, %vm924_vm7 }
  0x21   : > { %3488 = vmatprep.subr.bf16.mxu0 %v3487_v6  ;;  %v505_v10 = vld [vmem:[%s4133_s16] sm:$0xff]  ;;  %v506_v13 = vld [vmem:[%s4133_s16 + $0x8] sm:$0xff]  ;;  %v507_v1 = vld [vmem:[%s4133_s16 + $0x10] sm:$0xff]  ;;  %s4831_s15 = scalar_select %p493_p11, %s4079_s29, 1 }
  0x22   : > { %512 = vperm.xlu0 %3722, %v505_v10   ;;  %3506 = vmatpush1.bf16.xpose.msk.msra.mxu1 %vm4175_vm4, %v3504_v37  ;;  %v508_v4 = vld [vmem:[%s4133_s16 + $0x18] sm:$0xff]  ;;  %s4369_s16 = scalar_lea.vmem %s4960_s1, %s4973_s20  ;;  %s3981_s20 = smov 32   ;;  %vm3650_vm15 = vmpackc.low %vm2597_vm14, %vm2597_vm14 }
  0x23   : > { %3507 = vmatprep.subr.bf16.mxu1 %v3977_v33  ;;  %s4944_s21 = sshll.u32 %s4831_s15, 1  ;;  %s3202_s30 = sshll.u32 %s4079_s29, 5 }
  0x24   : > { %3490 = vmatpush3.bf16.msra.mxu0 %v3487_v6  ;;  %v730_v6 = vld [vmem:[%s4936_s6 + $0x88] sm:$0xff]  ;;  %s496_s24 = scalar_lea.vmem %s4965_s2, %s4944_s21  ;;  %s4850_s21 = scalar_lea.hbm %s4942_s12, %s3202_s30 }
  0x25   : > { %3492 = vmatprep.subr.bf16.mxu0 %v3491_v9  ;;  %v3532_v7 = vpack.c.bf16 %v730_v6, %v729_v5  ;;  %s3984_s2 = smov [#allocation4]  }
  0x26   : > { %515 = vperm.xlu0 %3722, %v506_v13   ;;  %v4250_v13 = vshrl.u32 %v509_v16, 7  ;;  %s3883_s3 = sshll.u32 %s3984_s2, 4  ;;  %s3884_s3 = int_to_ptr.vmem [resolvable:$false] %s3883_s3 }
  0x27   : > { %s3885_s4 = scalar_lea.vmem %s3884_s3, 64 }
  0x28   : > { %3494 = vmatpush3.bf16.msra.mxu0 %v3491_v9  ;;  %v707_v16 = vsub.s32 1, %v4250_v13  ;;  %v733_v36 = vsub.s32 6, %v4250_v13 }
  0x29   : > { %3496 = vmatprep.subr.bf16.mxu0 %v3495_v14 }
  0x2a   : > { %3510 = vmatpush1.bf16.xpose.msk.msra.mxu1 %vm4175_vm4, %v3508_v40  ;;  %v503_v40 = vld [vmem:[%s4935_s5 + $0x8] sm:$0xff] }
  0x2b   : > { %3511 = vmatprep.subr.bf16.mxu1 %v3977_v33  ;;  %v4298_v44 = vrot.slane %v503_v40, %v733_v36 }
  0x2c   : > { %3498 = vmatpush3.bf16.msra.mxu0 %v3495_v14 }
  0x32   : > { %3514 = vmatpush1.bf16.xpose.msk.msra.mxu1 %vm4175_vm4, %v3512_v43 }
  0x33   : > { %3515 = vmatprep.subr.bf16.mxu1 %v3977_v33 }
  0x3a   : > { %3518 = vmatpush1.bf16.xpose.msk.msra.mxu1 %vm4175_vm4, %v3516_v46 }
  0x3b   : > { %3519 = vmatprep.subr.bf16.mxu1 %v3977_v33 }
  0x42   : > { %3522 = vmatpush1.bf16.xpose.msk.msra.mxu1 %vm4175_vm4, %v3520_v49 }
  0x43   : > { %3523 = vmatprep.subr.bf16.mxu1 %v3977_v33 }
  0x4a   : > { %3526 = vmatpush1.bf16.xpose.msk.msra.mxu1 %vm4175_vm4, %v3524_v52 }
  0x4b   : > { %3527 = vmatprep.subr.bf16.mxu1 %v3977_v33 }
  0x52   : > { %3530 = vmatpush1.bf16.xpose.msk.msra.mxu1 %vm4175_vm4, %v3528_v2 }
  0x53   : > { %3531 = vmatprep.subr.bf16.mxu1 %v3977_v33 }
  0x5a   : > { %3534 = vmatpush1.bf16.xpose.msk.msra.mxu1 %vm4175_vm4, %v3532_v7 }
  0xa1   : > { %v513_v18 = vpop.permute.xlu0 %512 }
  0xa2   : > { %vm523_vm1 = vcmp.eq.s32.totalorder %v513_v18, %v4145_v17 }
  0xa3   : > { %v3092_v19 = vsel %vm523_vm1, 1.0, %v3976_v15  ;;  %vm2796_vm1 = vcmask 1040384  }
  0xa4   : > { %3322 = vmatprep.mubr.msk.f32.mxu0 %vm545_vm0, %v3092_v19  ;;  %v4254_v19 = vsub.s32 0, %v4250_v13 }
  0xa5   : > { %v516_v20 = vpop.permute.xlu0 %515 }
  0xa6   : > { %vm524_vm2 = vcmp.eq.s32.totalorder %v516_v20, %v4145_v17 }
  0xa7   : > { %v3093_v21 = vsel %vm524_vm2, 1.0, %v3976_v15  ;;  %vm2879_vm2 = vcmask 9216  }
  0xa8   : > { %3323 = vmatmul.mubr.msk.f32.vlgmr.msra.gmra.mrb[0].mxu0 %vm545_vm0, %v3093_v21  ;;  %v4260_v21 = vld [vmem:[%s4935_s5] sm:$0xff] }
  0xa9   : > { %v4292_v39 = vrot.slane %v4260_v21, %v733_v36 }
 0x17b   : > { %v3324_v23 = vpop.f32.mrb[0].mxu0 }
 0x17c   : > { %v624_v25 = vpop.f32.mrb[1].mxu0  ;;  %v630_v27 = vadd.f32 %v3324_v23, %v4161_v24 }
 0x17d   : > { %v625_v26 = vadd.f32 %v624_v25, %v4156_v22  ;;  %v4267_v25 = vrot.slane %v4260_v21, %v4254_v19 }
 0x17e   : > { %v647_v29 = vsel %vm643_vm3, %v630_v27, 0.0 }
 0x17f   : > { %v644_v28 = vsel %vm643_vm3, %v625_v26, 0.0 }
 0x180   : > { %645 = vadd.xlane.f32.xlu1 %v644_v28 }
 0x184   : > { %648 = vadd.xlane.f32.xlu1 %v647_v29  ;;  %v4274_v29 = vrot.slane %v4260_v21, %v707_v16 }
 0x20d   : > { %v646_v53 = vpop.xlane.xlu1 %645 }
 0x20e   : > { %v657_v54 = vmul.f32 0.020833334, %v646_v53 }
 0x210   : > { %v661_v55 = vsub.f32 %v625_v26, %v657_v54 }
 0x211   : > { %v649_v56 = vpop.xlane.xlu1 %648 }
 0x212   : > { %v658_v57 = vmul.f32 0.020833334, %v649_v56  ;;  %v665_v58 = vmul.f32 %v661_v55, %v661_v55 }
 0x214   : > { %v662_v59 = vsub.f32 %v630_v27, %v658_v57  ;;  %v669_v60 = vsel %vm643_vm3, %v665_v58, 0.0 }
 0x215   : > { %670 = vadd.xlane.f32.xlu0 %v669_v60 }
 0x216   : > { %v666_v61 = vmul.f32 %v662_v59, %v662_v59 }
 0x218   : > { %v672_v62 = vsel %vm643_vm3, %v666_v61, 0.0 }
 0x219   : > { %673 = vadd.xlane.f32.xlu1 %v672_v62 }
 0x22a   : > { %518 = vperm.xlu1 %3723, %v507_v1  }
 0x22e   : > { %521 = vperm.xlu1 %3723, %v508_v4  }
 0x2a2   : > { %v671_v8 = vpop.xlane.xlu0 %670 }
 0x2a3   : > { %v681_v9 = vmul.f32 0.020833334, %v671_v8 }
 0x2a5   : > { %v685_v10 = vadd.f32 1e-12, %v681_v9 }
 0x2a6   : > { %v674_v11 = vpop.xlane.xlu1 %673 }
 0x2a7   : > { %3794 = vrsqrt.f32 %v685_v10  ;;  %v682_v12 = vmul.f32 0.020833334, %v674_v11 }
 0x2a9   : > { %v686_v14 = vadd.f32 1e-12, %v682_v12 }
 0x2aa   : > { %v519_v18 = vpop.permute.xlu1 %518 }
 0x2ab   : > { %3796 = vrsqrt.f32 %v686_v14  ;;  %vm525_vm5 = vcmp.eq.s32.totalorder %v519_v18, %v4145_v17 }
 0x2ac   : > { %v3094_v20 = vsel %vm525_vm5, 1.0, %v3976_v15 }
 0x2ad   : > { %3325 = vmatprep.mubr.msk.f32.mxu0 %vm545_vm0, %v3094_v20 }
 0x2ae   : > { %v522_v23 = vpop.permute.xlu1 %521 }
 0x2af   : > { %vm526_vm6 = vcmp.eq.s32.totalorder %v522_v23, %v4145_v17 }
 0x2b0   : > { %v3095_v26 = vsel %vm526_vm6, 1.0, %v3976_v15 }
 0x2b1   : > { %v3795_v27 = vpop.eup %3794  ;;  %3326 = vmatmul.mubr.msk.f32.gmra.mrb[2].mxu0 %vm545_vm0, %v3095_v26  ;;  %vm3983_vm0 = vmmov 0  }
 0x2b2   : > { %v693_v28 = vmul.f32 %v3795_v27, %v661_v55 }
 0x2b4   : > { %v701_v30 = vmul.f32 %v4267_v25, %v693_v28 }
 0x2b5   : > { %v3797_v31 = vpop.eup %3796 }
 0x2b6   : > { %v4278_v17 = vadd.f32 %v4274_v29, %v701_v30  ;;  %v694_v33 = vmul.f32 %v3797_v31, %v662_v59 }
 0x2b8   : > { %3118 = vmatmul.mubr.msk.f32.vlgmr.msra.gmra.mrb[0].mxu1 %vm643_vm3, %v4278_v17  ;;  %v702_v34 = vmul.f32 %v4267_v25, %v694_v33 }
 0x2b9   : > { %875 = vmatprep.mubr.f32.mxu1 %v3976_v15 }
 0x2ba   : > { %v4285_v35 = vadd.f32 %v4274_v29, %v702_v34 }
 0x2bc   : > { %3119 = vmatmul.mubr.msk.f32.gmra.mrb[2].mxu1 %vm643_vm3, %v4285_v35 }
 0x2bd   : > { %881 = vmatprep.mubr.f32.mxu1 %v3976_v15 }
 0x384   : > { %v3327_v37 = vpop.f32.mrb[2].mxu0 }
 0x385   : > { %v634_v38 = vpop.f32.mrb[3].mxu0  ;;  %v640_v53 = vadd.f32 %v3327_v37, %v4161_v24 }
 0x386   : > { %v635_v55 = vadd.f32 %v634_v38, %v4156_v22 }
 0x387   : > { %v653_v54 = vsel %vm643_vm3, %v640_v53, 0.0 }
 0x388   : > { %v650_v56 = vsel %vm643_vm3, %v635_v55, 0.0 }
 0x38b   : > { %v871_v41 = vpop.f32.mrb[0].mxu1 }
 0x38c   : > { %v872_v42 = vadd.f32 %v871_v41, %v4292_v39  ;;  %v873_v43 = vpop.f32.mrb[1].mxu1 }
 0x38d   : > { %v4305_v49 = vadd.f32 %v873_v43, %v4298_v44 }
 0x38e   : > { %902 = vrot.lane.b32.xlu0 %v872_v42, %s3978_s22  ;;  %896 = vrot.lane.b32.xlu1 %v872_v42, %s3979_s0  ;;  %v908_v45 = vmul.f32 0.25, %v872_v42 }
 0x38f   : > { %v877_v46 = vpop.f32.mrb[2].mxu1 }
 0x390   : > { %v878_v47 = vadd.f32 %v877_v46, %v4292_v39  ;;  %v879_v48 = vpop.f32.mrb[3].mxu1  ;;  %3332 = vmatprep.mubr.msk.f32.mxu0 %vm924_vm7, %v908_v45 }
 0x391   : > { %v4308_v50 = vadd.f32 %v879_v48, %v4298_v44 }
 0x392   : > { %898 = vrot.lane.b32.xlu1 %v878_v47, %s3979_s0  ;;  %v4311_v51 = vpack.i.bf16 %v878_v47, %v872_v42  ;;  %v909_v14 = vmul.f32 0.25, %v878_v47 }
 0x393   : > { %v3739_v52 = vpack.i.bf16 %v4308_v50, %v4305_v49 }
 0x396   : > { %904 = vrot.lane.b32.xlu1 %v878_v47, %s3978_s22 }
 0x3ad   : > { %654 = vadd.xlane.f32.xlu0 %v653_v54 }
 0x3ba   : > { %651 = vadd.xlane.f32.xlu1 %v650_v56 }
 0x3cb   : > { %3725 = vrot.lane.b32.xlu1 %v4311_v51, %s3980_s23 }
 0x400   : > { %v897_v57 = vpop.permute.xlu1 %896  ;;  %v903_v24 = vpop.permute.xlu0 %902 }
 0x401   : > { %v910_v18 = vmul.f32 0.25, %v897_v57  ;;  %v912_v36 = vmul.f32 0.25, %v903_v24 }
 0x404   : > { %v899_v58 = vpop.permute.xlu1 %898 }
 0x405   : > { %v4322_v59 = vpack.i.bf16 %v899_v58, %v897_v57  ;;  %v911_v34 = vmul.f32 0.25, %v899_v58  ;;  %v1188_v58 = vld [vmem:[%s4369_s16] sm:$0x1] }
 0x406   : > { %vm1189_vm9 = vcmp.gt.f32.partialorder %v1188_v58, 0.0 }
 0x407   : > { %3730 = vrot.lane.b32.xlu0 %v4322_v59, %s3980_s23 }
 0x408   : > { %v905_v60 = vpop.permute.xlu1 %904 }
 0x409   : > { %v3734_v61 = vpack.i.bf16 %v905_v60, %v903_v24  ;;  %v913_v37 = vmul.f32 0.25, %v905_v60 }
 0x40b   : > { %3735 = vrot.lane.b32.xlu1 %v3734_v61, %s3980_s23 }
 0x43a   : > { %v655_v22 = vpop.xlane.xlu0 %654 }
 0x43b   : > { %v660_v62 = vmul.f32 0.020833334, %v655_v22 }
 0x43d   : > { %v664_v63 = vsub.f32 %v640_v53, %v660_v62 }
 0x43f   : > { %v668_v0 = vmul.f32 %v664_v63, %v664_v63 }
 0x441   : > { %v678_v1 = vsel %vm643_vm3, %v668_v0, 0.0 }
 0x442   : > { %679 = vadd.xlane.f32.xlu0 %v678_v1 }
 0x447   : > { %v652_v2 = vpop.xlane.xlu1 %651 }
 0x448   : > { %v659_v4 = vmul.f32 0.020833334, %v652_v2 }
 0x44a   : > { %v663_v5 = vsub.f32 %v635_v55, %v659_v4 }
 0x44b   : > { %v3726_v6 = vpop.permute.xlu1 %3725 }
 0x44c   : > { %v3728_v7 = vunpack.i.h.bf16 %v3726_v6  ;;  %v3727_v8 = vunpack.i.l.bf16 %v3726_v6  ;;  %v667_v9 = vmul.f32 %v663_v5, %v663_v5 }
 0x44e   : > { %v3535_v11 = vpack.c.bf16 %v3728_v7, %v3727_v8  ;;  %v675_v12 = vsel %vm643_vm3, %v667_v9, 0.0 }
 0x44f   : > { %676 = vadd.xlane.f32.xlu1 %v675_v12 }
 0x450   : > { %3537 = vmatprep.subr.msk.bf16.mxu0 %vm4330_vm8, %v3535_v11 }
 0x451   : > { %3540 = vmatpush3.bf16.xpose.msk.msra.mxu0 %vm4330_vm8, %v3535_v11 }
 0x458   : > { %3333 = vmatmul.mubr.msk.f32.vlgmr.msra.gmra.mrb[4].mxu0 %vm924_vm7, %v909_v14 }
 0x459   : > { %3339 = vmatprep.mubr.msk.f32.mxu0 %vm924_vm7, %v910_v18 }
 0x479   : > { %v3731_v20 = vpop.permute.xlu0 %3730 }
 0x47a   : > { %v3733_v23 = vunpack.i.h.bf16 %v3731_v20  ;;  %v3732_v26 = vunpack.i.l.bf16 %v3731_v20 }
 0x47c   : > { %v3541_v27 = vpack.c.bf16 %v3733_v23, %v3732_v26 }
 0x47d   : > { %v3736_v28 = vpop.permute.xlu1 %3735 }
 0x47e   : > { %v3738_v30 = vunpack.i.h.bf16 %v3736_v28  ;;  %v3737_v31 = vunpack.i.l.bf16 %v3736_v28  ;;  %3543 = vmatprep.subr.msk.bf16.mxu0 %vm4330_vm8, %v3541_v27 }
 0x47f   : > { %3546 = vmatpush3.bf16.xpose.msk.msra.mxu0 %vm4330_vm8, %v3541_v27 }
 0x480   : > { %v3547_v33 = vpack.c.bf16 %v3738_v30, %v3737_v31 }
 0x482   : > { %3549 = vmatprep.subr.msk.bf16.mxu0 %vm4330_vm8, %v3547_v33 }
 0x486   : > { %3340 = vmatmul.mubr.msk.f32.vlgmr.msra.gmra.mrb[6].mxu0 %vm924_vm7, %v911_v34 }
 0x487   : > { %3552 = vmatpush3.bf16.xpose.msk.msra.mxu0 %vm4330_vm8, %v3547_v33  ;;  %3346 = vmatprep.mubr.msk.f32.mxu0 %vm924_vm7, %v912_v36 }
 0x48e   : > { %3347 = vmatmul.mubr.msk.f32.vlgmr.msra.gmra.mrb[8].mxu0 %vm924_vm7, %v913_v37 }
 0x4cf   : > { %v680_v38 = vpop.xlane.xlu0 %679 }
 0x4d0   : > { %v684_v40 = vmul.f32 0.020833334, %v680_v38 }
 0x4d2   : > { %v688_v41 = vadd.f32 1e-12, %v684_v40 }
 0x4d4   : > { %3798 = vrsqrt.f32 %v688_v41 }
 0x4dc   : > { %v677_v42 = vpop.xlane.xlu1 %676 }
 0x4dd   : > { %v683_v43 = vmul.f32 0.020833334, %v677_v42 }
 0x4de   : > { %v3799_v46 = vpop.eup %3798 }
 0x4df   : > { %v687_v45 = vadd.f32 1e-12, %v683_v43  ;;  %v696_v53 = vmul.f32 %v3799_v46, %v664_v63 }
 0x4e1   : > { %3800 = vrsqrt.f32 %v687_v45  ;;  %v704_v56 = vmul.f32 %v4267_v25, %v696_v53 }
 0x4e3   : > { %v4361_v57 = vadd.f32 %v4274_v29, %v704_v56 }
 0x4eb   : > { %v3801_v47 = vpop.eup %3800 }
 0x4ec   : > { %v695_v48 = vmul.f32 %v3801_v47, %v663_v5 }
 0x4ee   : > { %v703_v54 = vmul.f32 %v4267_v25, %v695_v48  ;;  %v1190_v25 = vsel %vm1189_vm9, 1, %v3975_v3 }
 0x4ef   : > { %v1194_v24 = vrot.slane %v1190_v25, %v4254_v19 }
 0x4f0   : > { %v4354_v55 = vadd.f32 %v4274_v29, %v703_v54 }
 0x4f1   : > { %vm4374_vm10 = vcmp.eq.s32.totalorder %v1194_v24, 1 }
 0x4f2   : > { %3120 = vmatmul.mubr.msk.f32.gmra.mrb[4].mxu1 %vm643_vm3, %v4354_v55 }
 0x4f3   : > { %887 = vmatprep.mubr.f32.mxu1 %v3976_v15 }
 0x4f6   : > { %3121 = vmatmul.mubr.msk.f32.gmra.mrb[6].mxu1 %vm643_vm3, %v4361_v57 }
 0x52b   : > { %v3334_v29 = vpop.f32.mrb[4].mxu0 }
 0x52c   : > { %v1197_v61 = vsel %vm4374_vm10, %v3334_v29, -1e+30  ;;  %v1001_v22 = vpop.f32.mrb[5].mxu0 }
 0x52d   : > { %v1196_v62 = vsel %vm4374_vm10, %v1001_v22, -1e+30  ;;  %v1205_v63 = vsel %vm924_vm7, %v1197_v61, -inf }
 0x52e   : > { %1206 = vmax.xlane.f32.xlu1 %v1205_v63  ;;  %v1202_v0 = vsel %vm924_vm7, %v1196_v62, -inf }
 0x532   : > { %1203 = vmax.xlane.f32.xlu1 %v1202_v0 }
 0x559   : > { %v3341_v1 = vpop.f32.mrb[6].mxu0 }
 0x55a   : > { %v1199_v2 = vsel %vm4374_vm10, %v3341_v1, -1e+30  ;;  %v1090_v4 = vpop.f32.mrb[7].mxu0 }
 0x55b   : > { %v1198_v5 = vsel %vm4374_vm10, %v1090_v4, -1e+30  ;;  %v1211_v6 = vsel %vm924_vm7, %v1199_v2, -inf }
 0x55c   : > { %1212 = vmax.xlane.f32.xlu1 %v1211_v6  ;;  %v1208_v7 = vsel %vm924_vm7, %v1198_v5, -inf }
 0x55d   : > { %1209 = vmax.xlane.f32.xlu0 %v1208_v7 }
 0x561   : > { %v3348_v8 = vpop.f32.mrb[8].mxu0 }
 0x562   : > { %v1201_v9 = vsel %vm4374_vm10, %v3348_v8, -1e+30  ;;  %v1179_v11 = vpop.f32.mrb[9].mxu0 }
 0x563   : > { %v1200_v12 = vsel %vm4374_vm10, %v1179_v11, -1e+30  ;;  %v1217_v14 = vsel %vm924_vm7, %v1201_v9, -inf }
 0x564   : > { %1218 = vmax.xlane.f32.xlu1 %v1217_v14  ;;  %v1214_v18 = vsel %vm924_vm7, %v1200_v12, -inf }
 0x565   : > { %1215 = vmax.xlane.f32.xlu0 %v1214_v18 }
 0x57b   : > { %3740 = vrot.lane.b32.xlu0 %v3739_v52, %s3978_s22 }
 0x5bb   : > { %v1207_v27 = vpop.xlane.xlu1 %1206 }
 0x5bc   : > { %v1221_v36 = vsub.f32 %v1197_v61, %v1207_v27 }
 0x5be   : > { %v1228_v38 = vmul.f32 1.442695, %v1221_v36 }
 0x5bf   : > { %v1204_v34 = vpop.xlane.xlu1 %1203 }
 0x5c5   : > { %v883_v20 = vpop.f32.mrb[4].mxu1 }
 0x5c6   : > { %v4401_v23 = vadd.f32 %v883_v20, %v4292_v39  ;;  %v885_v26 = vpop.f32.mrb[5].mxu1 }
 0x5c7   : > { %v4411_v49 = vadd.f32 %v885_v26, %v4298_v44 }
 0x5c8   : > { %1552 = vrot.lane.b32.xlu1 %v4401_v23, %s3979_s0  ;;  %1558 = vrot.lane.b32.xlu0 %v4401_v23, %s3978_s22 }
 0x5c9   : > { %v889_v28 = vpop.f32.mrb[6].mxu1 }
 0x5ca   : > { %v4408_v30 = vadd.f32 %v889_v28, %v4292_v39  ;;  %v891_v31 = vpop.f32.mrb[7].mxu1  ;;  %v1220_v39 = vsub.f32 %v1196_v62, %v1204_v34 }
 0x5cb   : > { %v4414_v50 = vadd.f32 %v891_v31, %v4298_v44 }
 0x5cc   : > { %1554 = vrot.lane.b32.xlu1 %v4408_v30, %s3979_s0  ;;  %v4420_v52 = vpack.i.bf16 %v4408_v30, %v4401_v23  ;;  %v1226_v44 = vmul.f32 1.442695, %v1220_v39  ;;  %s3982_s0 = smov 16  }
 0x5cd   : > { %v3774_v33 = vpack.i.bf16 %v4414_v50, %v4411_v49 }
 0x5ce   : > { %3802 = vpow2.f32 %v1226_v44 }
 0x5cf   : > { %3804 = vpow2.f32 %v1228_v38 }
 0x5d0   : > { %1560 = vrot.lane.b32.xlu1 %v4408_v30, %s3978_s22 }
 0x5d4   : > { %3745 = vrot.lane.b32.xlu1 %v4311_v51, %s3981_s20 }
 0x5d8   : > { %v3803_v37 = vpop.eup %3802 }
 0x5d9   : > { %v1238_v40 = vsel %vm924_vm7, %v3803_v37, 0.0  ;;  %v3805_v51 = vpop.eup %3804 }
 0x5da   : > { %v1241_v56 = vsel %vm924_vm7, %v3805_v51, 0.0 }
 0x5e7   : > { %1239 = vadd.xlane.f32.xlu0 %v1238_v40 }
 0x5e9   : > { %v1213_v41 = vpop.xlane.xlu1 %1212 }
 0x5ea   : > { %v1223_v42 = vsub.f32 %v1199_v2, %v1213_v41  ;;  %v1210_v43 = vpop.xlane.xlu0 %1209 }
 0x5eb   : > { %v1222_v45 = vsub.f32 %v1198_v5, %v1210_v43 }
 0x5ec   : > { %v1232_v46 = vmul.f32 1.442695, %v1223_v42 }
 0x5ed   : > { %v1230_v47 = vmul.f32 1.442695, %v1222_v45 }
 0x5ee   : > { %3806 = vpow2.f32 %v1232_v46 }
 0x5ef   : > { %3808 = vpow2.f32 %v1230_v47 }
 0x5f1   : > { %v1219_v48 = vpop.xlane.xlu1 %1218 }
 0x5f2   : > { %v1225_v53 = vsub.f32 %v1201_v9, %v1219_v48  ;;  %v1216_v60 = vpop.xlane.xlu0 %1215 }
 0x5f3   : > { %v1224_v63 = vsub.f32 %v1200_v12, %v1216_v60 }
 0x5f4   : > { %v1236_v54 = vmul.f32 1.442695, %v1225_v53 }
 0x5f5   : > { %v1234_v0 = vmul.f32 1.442695, %v1224_v63 }
 0x5f6   : > { %3810 = vpow2.f32 %v1236_v54  ;;  %v3741_v22 = vpop.permute.xlu0 %3740 }
 0x5f7   : > { %3812 = vpow2.f32 %v1234_v0 }
 0x5f8   : > { %v4430_v58 = vpop.eup %3806  ;;  %1242 = vadd.xlane.f32.xlu1 %v1241_v56 }
 0x5f9   : > { %v1247_v25 = vsel %vm924_vm7, %v4430_v58, 0.0  ;;  %v3809_v24 = vpop.eup %3808 }
 0x5fa   : > { %1248 = vadd.xlane.f32.xlu0 %v1247_v25  ;;  %v1244_v29 = vsel %vm924_vm7, %v3809_v24, 0.0 }
 0x5fe   : > { %1245 = vadd.xlane.f32.xlu0 %v1244_v29 }
 0x600   : > { %v4435_v61 = vpop.eup %3810 }
 0x601   : > { %v1253_v62 = vsel %vm924_vm7, %v4435_v61, 0.0  ;;  %v4442_v1 = vpop.eup %3812 }
 0x602   : > { %1254 = vadd.xlane.f32.xlu0 %v1253_v62  ;;  %v1250_v2 = vsel %vm924_vm7, %v4442_v1, 0.0 }
 0x609   : > { %3755 = vrot.lane.b32.xlu1 %v3741_v22, %s3981_s20 }
 0x618   : > { %3750 = vrot.lane.b32.xlu0 %v4322_v59, %s3981_s20 }
 0x62d   : > { %1251 = vadd.xlane.f32.xlu1 %v1250_v2  ;;  %v1564_v2 = vmul.f32 0.25, %v4401_v23 }
 0x63a   : > { %v4446_v4 = vpop.permute.xlu1 %1552  ;;  %v4458_v59 = vpop.permute.xlu0 %1558 }
 0x63e   : > { %v4448_v5 = vpop.permute.xlu1 %1554  ;;  %3760 = vrot.lane.b32.xlu1 %v4420_v52, %s3980_s23 }
 0x63f   : > { %v4454_v6 = vpack.i.bf16 %v4448_v5, %v4446_v4  ;;  %v1567_v23 = vmul.f32 0.25, %v4448_v5 }
 0x641   : > { %3765 = vrot.lane.b32.xlu0 %v4454_v6, %s3980_s23 }
 0x642   : > { %v4460_v7 = vpop.permute.xlu1 %1560 }
 0x643   : > { %v3769_v8 = vpack.i.bf16 %v4460_v7, %v4458_v59 }
 0x645   : > { %3770 = vrot.lane.b32.xlu1 %v3769_v8, %s3980_s23 }
 0x646   : > { %v3746_v9 = vpop.permute.xlu1 %3745 }
 0x647   : > { %v3748_v11 = vunpack.i.h.bf16 %v3746_v9  ;;  %v3747_v12 = vunpack.i.l.bf16 %v3746_v9 }
 0x649   : > { %v3553_v14 = vpack.c.bf16 %v3748_v11, %v3747_v12  ;;  %v1566_v12 = vmul.f32 0.25, %v4446_v4 }
 0x64b   : > { %3554 = vmatprep.subr.bf16.mxu0 %v3553_v14 }
 0x64c   : > { %3556 = vmatpush3.bf16.msra.mxu0 %v3553_v14 }
 0x674   : > { %v1240_v18 = vpop.xlane.xlu0 %1239 }
 0x675   : > { %3814 = vrcp.f32 %v1240_v18  ;;  %v1568_v18 = vmul.f32 0.25, %v4458_v59  ;;  %v3152_v59 = vld [vmem:[%s4369_s16 + $0x1] sm:$0x1] }
 0x676   : > { %vm1845_vm11 = vcmp.gt.f32.partialorder %v3152_v59, 0.0 }
 0x67f   : > { %v3815_v20 = vpop.eup %3814 }
 0x680   : > { %v1262_v26 = vmul.f32 %v3815_v20, %v3803_v37 }
 0x682   : > { %3353 = vmatprep.mubr.msk.f32.mxu0 %vm924_vm7, %v1262_v26 }
 0x685   : > { %v1243_v27 = vpop.xlane.xlu1 %1242 }
 0x686   : > { %3816 = vrcp.f32 %v1243_v27  ;;  %v1846_v27 = vsel %vm1845_vm11, 1, %v3975_v3 }
 0x687   : > { %v1249_v28 = vpop.xlane.xlu0 %1248 }
 0x689   : > { %v3756_v36 = vpop.permute.xlu1 %3755 }
 0x68a   : > { %v3758_v40 = vunpack.i.h.bf16 %v3756_v36  ;;  %v3757_v41 = vunpack.i.l.bf16 %v3756_v36 }
 0x68b   : > { %v1246_v31 = vpop.xlane.xlu0 %1245 }
 0x68c   : > { %3818 = vrcp.f32 %v1246_v31  ;;  %v3561_v48 = vpack.c.bf16 %v3758_v40, %v3757_v41 }
 0x68d   : > { %3820 = vrcp.f32 %v1249_v28 }
 0x68f   : > { %v1255_v34 = vpop.xlane.xlu0 %1254 }
 0x690   : > { %v3817_v39 = vpop.eup %3816  ;;  %3822 = vrcp.f32 %v1255_v34 }
 0x691   : > { %v1263_v44 = vmul.f32 %v3817_v39, %v3805_v51 }
 0x693   : > { %3354 = vmatmul.mubr.msk.f32.vlgmr.msra.gmra.mrb[10].mxu0 %vm924_vm7, %v1263_v44  ;;  %v3751_v38 = vpop.permute.xlu0 %3750 }
 0x694   : > { %v3753_v42 = vunpack.i.h.bf16 %v3751_v38  ;;  %v3752_v43 = vunpack.i.l.bf16 %v3751_v38 }
 0x696   : > { %v3819_v37 = vpop.eup %3818  ;;  %v3557_v45 = vpack.c.bf16 %v3753_v42, %v3752_v43 }
 0x697   : > { %v3821_v46 = vpop.eup %3820  ;;  %v1264_v47 = vmul.f32 %v3819_v37, %v3809_v24 }
 0x698   : > { %3558 = vmatprep.subr.bf16.mxu0 %v3557_v45  ;;  %v1265_v53 = vmul.f32 %v3821_v46, %v4430_v58 }
 0x699   : > { %3560 = vmatpush3.bf16.msra.mxu0 %v3557_v45  ;;  %3360 = vmatprep.mubr.msk.f32.mxu0 %vm924_vm7, %v1264_v47 }
 0x69a   : > { %3562 = vmatprep.subr.bf16.mxu0 %v3561_v48  ;;  %v3823_v24 = vpop.eup %3822 }
 0x69b   : > { %v1267_v0 = vmul.f32 %v3823_v24, %v4435_v61  ;;  %v1565_v61 = vmul.f32 0.25, %v4408_v30  ;;  %v1569_v30 = vmul.f32 0.25, %v4460_v7  ;;  %v1850_v7 = vrot.slane %v1846_v27, %v4254_v19 }
 0x69c   : > { %3361 = vmatmul.mubr.msk.f32.vlgmr.msra.gmra.mrb[12].mxu0 %vm924_vm7, %v1265_v53 }
 0x69d   : > { %3564 = vmatpush3.bf16.msra.mxu0 %v3561_v48  ;;  %vm4513_vm12 = vcmp.eq.s32.totalorder %v1850_v7, 1 }
 0x6b3   : > { %v3766_v29 = vpop.permute.xlu0 %3765 }
 0x6b4   : > { %v3768_v62 = vunpack.i.h.bf16 %v3766_v29  ;;  %v3767_v63 = vunpack.i.l.bf16 %v3766_v29 }
 0x6b6   : > { %v3571_v8 = vpack.c.bf16 %v3768_v62, %v3767_v63 }
 0x6ba   : > { %v1252_v51 = vpop.xlane.xlu1 %1251 }
 0x6bb   : > { %3824 = vrcp.f32 %v1252_v51 }
 0x6be   : > { %v3761_v54 = vpop.permute.xlu1 %3760 }
 0x6bf   : > { %v3763_v56 = vunpack.i.h.bf16 %v3761_v54  ;;  %v3762_v25 = vunpack.i.l.bf16 %v3761_v54 }
 0x6c1   : > { %v3565_v60 = vpack.c.bf16 %v3763_v56, %v3762_v25 }
 0x6c2   : > { %v3771_v9 = vpop.permute.xlu1 %3770 }
 0x6c3   : > { %3567 = vmatprep.subr.msk.bf16.mxu0 %vm4330_vm8, %v3565_v60  ;;  %v3773_v11 = vunpack.i.h.bf16 %v3771_v9 }
 0x6c5   : > { %v3825_v22 = vpop.eup %3824 }
 0x6c6   : > { %v1266_v58 = vmul.f32 %v3825_v22, %v4442_v1  ;;  %v3772_v1 = vunpack.i.l.bf16 %v3771_v9 }
 0x6c8   : > { %3367 = vmatprep.mubr.msk.f32.mxu0 %vm924_vm7, %v1266_v58  ;;  %v3577_v14 = vpack.c.bf16 %v3773_v11, %v3772_v1 }
 0x6c9   : > { %3368 = vmatmul.mubr.msk.f32.vlgmr.msra.gmra.mrb[14].mxu0 %vm924_vm7, %v1267_v0 }
 0x6ca   : > { %3570 = vmatpush3.bf16.xpose.msk.msra.mxu0 %vm4330_vm8, %v3565_v60  ;;  %3374 = vmatprep.mubr.msk.f32.mxu0 %vm924_vm7, %v1564_v2 }
 0x6cb   : > { %3573 = vmatprep.subr.msk.bf16.mxu0 %vm4330_vm8, %v3571_v8 }
 0x6d1   : > { %3375 = vmatmul.mubr.msk.f32.vlgmr.msra.gmra.mrb[16].mxu0 %vm924_vm7, %v1565_v61 }
 0x6d2   : > { %3576 = vmatpush3.bf16.xpose.msk.msra.mxu0 %vm4330_vm8, %v3571_v8  ;;  %3381 = vmatprep.mubr.msk.f32.mxu0 %vm924_vm7, %v1566_v12 }
 0x6d3   : > { %3579 = vmatprep.subr.msk.bf16.mxu0 %vm4330_vm8, %v3577_v14 }
 0x6d9   : > { %3382 = vmatmul.mubr.msk.f32.vlgmr.msra.gmra.mrb[18].mxu0 %vm924_vm7, %v1567_v23 }
 0x6da   : > { %3582 = vmatpush3.bf16.xpose.msk.msra.mxu0 %vm4330_vm8, %v3577_v14  ;;  %3388 = vmatprep.mubr.msk.f32.mxu0 %vm924_vm7, %v1568_v18 }
 0x6e1   : > { %3389 = vmatmul.mubr.msk.f32.vlgmr.msra.gmra.mrb[20].mxu0 %vm924_vm7, %v1569_v30 }
 0x766   : > { %v4498_v4 = vpop.f32.mrb[10].mxu0 }
 0x767   : > { %v4500_v20 = vpop.f32.mrb[11].mxu0 }
 0x76f   : > { %v4502_v26 = vpop.f32.mrb[12].mxu0 }
 0x770   : > { %v4504_v5 = vpop.f32.mrb[13].mxu0 }
 0x79c   : > { %v4508_v10 = vpop.f32.mrb[14].mxu0 }
 0x79d   : > { %v4510_v28 = vpop.f32.mrb[15].mxu0 }
 0x7a4   : > { %v3376_v34 = vpop.f32.mrb[16].mxu0 }
 0x7a5   : > { %v1853_v39 = vsel %vm4513_vm12, %v3376_v34, -1e+30  ;;  %v1656_v44 = vpop.f32.mrb[17].mxu0 }
 0x7a6   : > { %v1852_v36 = vsel %vm4513_vm12, %v1656_v44, -1e+30  ;;  %v1861_v3 = vsel %vm924_vm7, %v1853_v39, -inf  ;;  %v2205_v44 = vld [vmem:[%s4937_s7] sm:$0xff] }
 0x7a7   : > { %1862 = vmax.xlane.f32.xlu1 %v1861_v3  ;;  %v1858_v38 = vsel %vm924_vm7, %v1852_v36, -inf }
 0x7a8   : > { %1859 = vmax.xlane.f32.xlu0 %v1858_v38 }
 0x7ac   : > { %v3383_v40 = vpop.f32.mrb[18].mxu0 }
 0x7ad   : > { %v1855_v41 = vsel %vm4513_vm12, %v3383_v40, -1e+30  ;;  %v1745_v42 = vpop.f32.mrb[19].mxu0  ;;  %v2207_v40 = vld [vmem:[%s4937_s7 + $0x10] sm:$0xff] }
 0x7ae   : > { %v1854_v43 = vsel %vm4513_vm12, %v1745_v42, -1e+30  ;;  %v1867_v45 = vsel %vm924_vm7, %v1855_v41, -inf  ;;  %v2209_v42 = vld [vmem:[%s4937_s7 + $0x20] sm:$0xff] }
 0x7af   : > { %v1864_v37 = vsel %vm924_vm7, %v1854_v43, -inf }
 0x7b0   : > { %1865 = vmax.xlane.f32.xlu0 %v1864_v37 }
 0x7b4   : > { %1868 = vmax.xlane.f32.xlu0 %v1867_v45  ;;  %v3390_v46 = vpop.f32.mrb[20].mxu0 }
 0x7b5   : > { %v1857_v47 = vsel %vm4513_vm12, %v3390_v46, -1e+30  ;;  %v1834_v48 = vpop.f32.mrb[21].mxu0 }
 0x7b6   : > { %v1856_v53 = vsel %vm4513_vm12, %v1834_v48, -1e+30  ;;  %v1873_v51 = vsel %vm924_vm7, %v1857_v47, -inf }
 0x7b7   : > { %v1870_v54 = vsel %vm924_vm7, %v1856_v53, -inf }
 0x7b8   : > { %1874 = vmax.xlane.f32.xlu0 %v1873_v51  ;;  %1871 = vmax.xlane.f32.xlu1 %v1870_v54 }
 0x7c9   : > { %3775 = vrot.lane.b32.xlu1 %v3774_v33, %s3978_s22 }
 0x834   : > { %v1863_v56 = vpop.xlane.xlu1 %1862 }
 0x835   : > { %v1877_v25 = vsub.f32 %v1853_v39, %v1863_v56  ;;  %v1860_v60 = vpop.xlane.xlu0 %1859 }
 0x836   : > { %v1876_v29 = vsub.f32 %v1852_v36, %v1860_v60  ;;  %v2206_v36 = vld [vmem:[%s4937_s7 + $0x8] sm:$0xff] }
 0x837   : > { %v1884_v24 = vmul.f32 1.442695, %v1877_v25  ;;  %v3595_v3 = vpack.c.bf16 %v2206_v36, %v2205_v44 }
 0x838   : > { %v1882_v22 = vmul.f32 1.442695, %v1876_v29 }
 0x839   : > { %3826 = vpow2.f32 %v1884_v24  ;;  %3597 = vmatprep.subr.msk.bf16.mxu1 %vm4175_vm4, %v3595_v3 }
 0x83a   : > { %3828 = vpow2.f32 %v1882_v22  ;;  %3600 = vmatpush3.bf16.xpose.msk.msra.mxu1 %vm4175_vm4, %v3595_v3  ;;  %v2213_v3 = vsub.s32 7, %v4250_v13 }
 0x83d   : > { %v1866_v62 = vpop.xlane.xlu0 %1865 }
 0x83e   : > { %v1878_v63 = vsub.f32 %v1854_v43, %v1866_v62  ;;  %v2210_v43 = vld [vmem:[%s4937_s7 + $0x28] sm:$0xff] }
 0x840   : > { %v1886_v8 = vmul.f32 1.442695, %v1878_v63 }
 0x841   : > { %v1869_v58 = vpop.xlane.xlu0 %1868 }
 0x842   : > { %v1879_v0 = vsub.f32 %v1855_v41, %v1869_v58  ;;  %v2208_v41 = vld [vmem:[%s4937_s7 + $0x18] sm:$0xff] }
 0x843   : > { %v4539_v2 = vpop.eup %3826 }
 0x844   : > { %v1888_v9 = vmul.f32 1.442695, %v1879_v0  ;;  %v1897_v49 = vsel %vm924_vm7, %v4539_v2, 0.0  ;;  %v3829_v50 = vpop.eup %3828 }
 0x845   : > { %1898 = vadd.xlane.f32.xlu0 %v1897_v49  ;;  %v1875_v33 = vpop.xlane.xlu0 %1874  ;;  %v1872_v11 = vpop.xlane.xlu1 %1871  ;;  %v1894_v23 = vsel %vm924_vm7, %v3829_v50, 0.0 }
 0x846   : > { %3830 = vpow2.f32 %v1888_v9  ;;  %v1881_v1 = vsub.f32 %v1857_v47, %v1875_v33  ;;  %v1880_v61 = vsub.f32 %v1856_v53, %v1872_v11 }
 0x847   : > { %3832 = vpow2.f32 %v1886_v8 }
 0x848   : > { %v1892_v12 = vmul.f32 1.442695, %v1881_v1  ;;  %v1890_v14 = vmul.f32 1.442695, %v1880_v61 }
 0x849   : > { %1895 = vadd.xlane.f32.xlu0 %v1894_v23  ;;  %v3776_v38 = vpop.permute.xlu1 %3775 }
 0x84a   : > { %3834 = vpow2.f32 %v1890_v14 }
 0x84b   : > { %3836 = vpow2.f32 %v1892_v12 }
 0x850   : > { %v4544_v18 = vpop.eup %3830 }
 0x851   : > { %v1903_v30 = vsel %vm924_vm7, %v4544_v18, 0.0  ;;  %v4548_v59 = vpop.eup %3832 }
 0x852   : > { %1904 = vadd.xlane.f32.xlu0 %v1903_v30  ;;  %v1900_v7 = vsel %vm924_vm7, %v4548_v59, 0.0 }
 0x854   : > { %v4550_v27 = vpop.eup %3834 }
 0x855   : > { %v4554_v31 = vpop.eup %3836  ;;  %v1906_v34 = vsel %vm924_vm7, %v4550_v27, 0.0 }
 0x856   : > { %1901 = vadd.xlane.f32.xlu0 %v1900_v7  ;;  %1907 = vadd.xlane.f32.xlu1 %v1906_v34  ;;  %v1909_v39 = vsel %vm924_vm7, %v4554_v31, 0.0 }
 0x85a   : > { %1910 = vadd.xlane.f32.xlu0 %v1909_v39 }
 0x867   : > { %1533 = vrot.lane.b32.xlu1 %v4502_v26, %s3982_s0  ;;  %v3601_v26 = vpack.c.bf16 %v2208_v41, %v2207_v40 }
 0x869   : > { %3603 = vmatprep.subr.msk.bf16.mxu1 %vm4175_vm4, %v3601_v26 }
 0x86a   : > { %3606 = vmatpush3.bf16.xpose.msk.msra.mxu1 %vm4175_vm4, %v3601_v26 }
 0x870   : > { %3780 = vrot.lane.b32.xlu0 %v4420_v52, %s3981_s20  ;;  %v3607_v52 = vpack.c.bf16 %v2210_v43, %v2209_v42 }
 0x872   : > { %3609 = vmatprep.subr.msk.bf16.mxu1 %vm4175_vm4, %v3607_v52 }
 0x873   : > { %3612 = vmatpush3.bf16.xpose.msk.msra.mxu1 %vm4175_vm4, %v3607_v52 }
 0x874   : > { %3785 = vrot.lane.b32.xlu0 %v4454_v6, %s3981_s20 }
 0x878   : > { %3790 = vrot.lane.b32.xlu0 %v3776_v38, %s3981_s20  ;;  %v2214_v38 = vrot.slane %v4260_v21, %v2213_v3 }
 0x87c   : > { %1531 = vrot.lane.b32.xlu0 %v4504_v5, %s3982_s0 }
 0x880   : > { %1539 = vrot.lane.b32.xlu0 %v4510_v28, %s3981_s20 }
 0x884   : > { %1541 = vrot.lane.b32.xlu0 %v4508_v10, %s3981_s20 }
 0x8d2   : > { %v1899_v6 = vpop.xlane.xlu0 %1898 }
 0x8d6   : > { %v1896_v37 = vpop.xlane.xlu0 %1895 }
 0x8d7   : > { %3838 = vrcp.f32 %v1896_v37 }
 0x8d8   : > { %3840 = vrcp.f32 %v1899_v6 }
 0x8df   : > { %v1905_v45 = vpop.xlane.xlu0 %1904 }
 0x8e1   : > { %v3839_v46 = vpop.eup %3838 }
 0x8e2   : > { %v1918_v47 = vmul.f32 %v3839_v46, %v3829_v50  ;;  %v3841_v56 = vpop.eup %3840 }
 0x8e3   : > { %v1902_v48 = vpop.xlane.xlu0 %1901  ;;  %v1908_v53 = vpop.xlane.xlu1 %1907  ;;  %v1919_v22 = vmul.f32 %v3841_v56, %v4539_v2  ;;  %v2407_v56 = vld [vmem:[%s4938_s8 + $0x28] sm:$0xff] }
 0x8e4   : > { %3395 = vmatprep.mubr.msk.f32.mxu0 %vm924_vm7, %v1918_v47  ;;  %3842 = vrcp.f32 %v1902_v48  ;;  %v2402_v48 = vld [vmem:[%s4938_s8] sm:$0xff] }
 0x8e5   : > { %3844 = vrcp.f32 %v1905_v45 }
 0x8e6   : > { %3846 = vrcp.f32 %v1908_v53  ;;  %v2403_v53 = vld [vmem:[%s4938_s8 + $0x8] sm:$0xff] }
 0x8e7   : > { %v1911_v51 = vpop.xlane.xlu0 %1910  ;;  %v1534_v23 = vpop.permute.xlu1 %1533 }
 0x8e8   : > { %3848 = vrcp.f32 %v1911_v51  ;;  %v1546_v30 = vsel %vm924_vm7, %v4498_v4, %v1534_v23  ;;  %v2404_v51 = vld [vmem:[%s4938_s8 + $0x10] sm:$0xff]  ;;  %v2410_v23 = vld [vmem:[%s4938_s8 + $0x40] sm:$0xff] }
 0x8eb   : > { %v3781_v5 = vpop.permute.xlu0 %3780 }
 0x8ec   : > { %v3783_v28 = vunpack.i.h.bf16 %v3781_v5  ;;  %v3782_v54 = vunpack.i.l.bf16 %v3781_v5  ;;  %v3613_v5 = vpack.c.bf16 %v2403_v53, %v2402_v48 }
 0x8ee   : > { %v3583_v10 = vpack.c.bf16 %v3783_v28, %v3782_v54  ;;  %v3843_v60 = vpop.eup %3842  ;;  %v2405_v28 = vld [vmem:[%s4938_s8 + $0x18] sm:$0xff] }
 0x8ef   : > { %v3786_v25 = vpop.permute.xlu0 %3785  ;;  %v3845_v63 = vpop.eup %3844  ;;  %v1920_v0 = vmul.f32 %v3843_v60, %v4548_v59  ;;  %v3619_v54 = vpack.c.bf16 %v2405_v28, %v2404_v51 }
 0x8f0   : > { %v3788_v29 = vunpack.i.h.bf16 %v3786_v25  ;;  %v3787_v24 = vunpack.i.l.bf16 %v3786_v25  ;;  %3584 = vmatprep.subr.bf16.mxu0 %v3583_v10  ;;  %v3847_v8 = vpop.eup %3846  ;;  %v1921_v50 = vmul.f32 %v3845_v63, %v4544_v18 }
 0x8f1   : > { %3586 = vmatpush3.bf16.msra.mxu0 %v3583_v10  ;;  %v1922_v2 = vmul.f32 %v3847_v8, %v4550_v27  ;;  %v2406_v10 = vld [vmem:[%s4938_s8 + $0x20] sm:$0xff] }
 0x8f2   : > { %v3587_v62 = vpack.c.bf16 %v3788_v29, %v3787_v24  ;;  %v3849_v11 = vpop.eup %3848  ;;  %v3625_v25 = vpack.c.bf16 %v2407_v56, %v2406_v10  ;;  %v2588_v10 = vld [vmem:[%s4939_s9 + $0x8] sm:$0xff] }
 0x8f3   : > { %v3791_v58 = vpop.permute.xlu0 %3790  ;;  %v1923_v61 = vmul.f32 %v3849_v11, %v4554_v31 }
 0x8f4   : > { %v3793_v9 = vunpack.i.h.bf16 %v3791_v58  ;;  %v3792_v49 = vunpack.i.l.bf16 %v3791_v58  ;;  %3396 = vmatmul.mubr.msk.f32.vlgmr.msra.gmra.mrb[22].mxu0 %vm924_vm7, %v1919_v22  ;;  %3588 = vmatprep.subr.bf16.mxu0 %v3587_v62 }
 0x8f5   : > { %3590 = vmatpush3.bf16.msra.mxu0 %v3587_v62  ;;  %3402 = vmatprep.mubr.msk.f32.mxu0 %vm924_vm7, %v1920_v0 }
 0x8f6   : > { %v3591_v33 = vpack.c.bf16 %v3793_v9, %v3792_v49 }
 0x8f7   : > { %v1532_v1 = vpop.permute.xlu0 %1531 }
 0x8f8   : > { %3403 = vmatmul.mubr.msk.f32.vlgmr.msra.gmra.mrb[24].mxu0 %vm924_vm7, %v1921_v50  ;;  %3592 = vmatprep.subr.bf16.mxu0 %v3591_v33  ;;  %v1545_v12 = vsel %vm924_vm7, %v4500_v20, %v1532_v1 }
 0x8f9   : > { %3594 = vmatpush3.bf16.msra.mxu0 %v3591_v33  ;;  %3409 = vmatprep.mubr.msk.f32.mxu0 %vm924_vm7, %v1922_v2 }
 0x8fa   : > { %3615 = vmatprep.subr.msk.bf16.mxu0 %vm4175_vm4, %v3613_v5 }
 0x8fb   : > { %v1540_v14 = vpop.permute.xlu0 %1539 }
 0x8fc   : > { %v1548_v18 = vsel %vm1547_vm13, %v1545_v12, %v1540_v14  ;;  %3410 = vmatmul.mubr.msk.f32.vlgmr.msra.gmra.mrb[26].mxu0 %vm924_vm7, %v1923_v61 }
 0x8fd   : > { %3424 = vmatprep.mubr.msk.f32.mxu1 %vm643_vm3, %v1548_v18  ;;  %v2411_v18 = vld [vmem:[%s4938_s8 + $0x48] sm:$0xff] }
 0x8ff   : > { %v1542_v59 = vpop.permute.xlu0 %1541 }
 0x900   : > { %v1549_v27 = vsel %vm1547_vm13, %v1546_v30, %v1542_v59  ;;  %v3637_v30 = vpack.c.bf16 %v2411_v18, %v2410_v23  ;;  %v2412_v59 = vld [vmem:[%s4938_s8 + $0x50] sm:$0xff] }
 0x901   : > { %3425 = vmatmul.mubr.msk.f32.vlgmr.msra.gmra.mrb[8].mxu1 %vm643_vm3, %v1549_v27  ;;  %v2413_v27 = vld [vmem:[%s4938_s8 + $0x58] sm:$0xff] }
 0x902   : > { %3618 = vmatpush3.bf16.xpose.msk.msra.mxu0 %vm4175_vm4, %v3613_v5 }
 0x903   : > { %3621 = vmatprep.subr.msk.bf16.mxu0 %vm4175_vm4, %v3619_v54 }
 0x90a   : > { %3624 = vmatpush3.bf16.xpose.msk.msra.mxu0 %vm4175_vm4, %v3619_v54  ;;  %v2587_v54 = vld [vmem:[%s4939_s9] sm:$0xff] }
 0x90b   : > { %3627 = vmatprep.subr.msk.bf16.mxu0 %vm4175_vm4, %v3625_v25  ;;  %v3649_v56 = vpack.c.bf16 %v2588_v10, %v2587_v54 }
 0x90d   : > { %3651 = vmatprep.subr.msk.bf16.mxu1 %vm3650_vm15, %v3649_v56 }
 0x90e   : > { %3654 = vmatpush3.bf16.xpose.msk.msra.mxu1 %vm3650_vm15, %v3649_v56 }
 0x912   : > { %3630 = vmatpush3.bf16.xpose.msk.msra.mxu0 %vm4175_vm4, %v3625_v25  ;;  %v2589_v25 = vld [vmem:[%s4939_s9 + $0x10] sm:$0xff] }
 0x9c7   : > { %v3397_v7 = vpop.f32.mrb[22].mxu0 }
 0x9c8   : > { %v2002_v31 = vpop.f32.mrb[23].mxu0 }
 0x9cb   : > { %v3404_v34 = vpop.f32.mrb[24].mxu0 }
 0x9cc   : > { %v2089_v20 = vpop.f32.mrb[25].mxu0  ;;  %2189 = vrot.lane.b32.xlu0 %v3404_v34, %s3982_s0 }
 0x9cf   : > { %v3411_v39 = vpop.f32.mrb[26].mxu0 }
 0x9d0   : > { %2187 = vrot.lane.b32.xlu0 %v2089_v20, %s3982_s0  ;;  %v2176_v44 = vpop.f32.mrb[27].mxu0 }
 0x9d1   : > { %2195 = vrot.lane.b32.xlu1 %v2176_v44, %s3981_s20 }
 0x9d4   : > { %v3426_v36 = vpop.f32.mrb[8].mxu1  ;;  %2197 = vrot.lane.b32.xlu0 %v3411_v39, %s3981_s20  ;;  %s4790_s20 = sand.u32 1, %s3965_s26  }
 0x9d5   : > { %v2311_v4 = vpop.f32.mrb[9].mxu1  ;;  %v2317_v40 = vadd.f32 %v3426_v36, %v2214_v38  ;;  %s3084_s0 = sshll.u32 %s4790_s20, 5  ;;  %s3085_s16 = sshll.u32 %s4790_s20, 1 }
 0x9d6   : > { %v2312_v41 = vadd.f32 %v2311_v4, %v2214_v38  ;;  %s4799_s23 = scalar_lea.vmem [#allocation2], %s3084_s0  ;;  %s4824_s17 = scalar_lea.vmem [#allocation4], %s3085_s16 }
 0x9d7   : > { %v2331_v26 = vadd.f32 %v2317_v40, %v4285_v35  ;;  %s2941_s16 = sshll.u32 %s4824_s17, 4  ;;  %s2942_s16 = int_to_ptr.vmem [resolvable:$true] %s2941_s16 }
 0x9d8   : > { %v2330_v42 = vadd.f32 %v2312_v41, %v4278_v17  ;;  %s3879_s1 = scalar_lea.vmem %s2942_s16, 32  ;;  %p3886_p1 = scmp.lt.s32.totalorder %s2942_s16, %s3884_s3 }
 0x9d9   : > { %v2337_v43 = vsel %vm643_vm3, %v2331_v26, 0.0  ;;  %p3880_p12 = scmp.ne.s32.totalorder %s2942_s16, %s3879_s1  ;;  %p3887_p2 = scmp.lt.s32.totalorder %s3885_s4, %s3879_s1 }
 0x9da   : > { %v2334_v52 = vsel %vm643_vm3, %v2330_v42, 0.0 }
 0x9db   : > { %p3881_p13 = pnand %p3880_p12, %p4096_p5  ;;  %p3888_p3 = por %p3887_p2, %p3886_p1 }
 0x9dd   : > { %p3882_p0 = pneg %p3881_p13 }
 0x9df   : > { %p3889_p4 = pnand %p3888_p3, %p3882_p0 }
 0x9f3   : > { %2338 = vadd.xlane.f32.xlu0 %v2337_v43 }
 0x9f5   : > { %2335 = vadd.xlane.f32.xlu1 %v2334_v52 }
 0xa3e   : > { %v2190_v6 = vpop.permute.xlu0 %2189 }
 0xa3f   : > { %v2202_v21 = vsel %vm924_vm7, %v3397_v7, %v2190_v6  ;;  %v3643_v7 = vpack.c.bf16 %v2413_v27, %v2412_v59  ;;  %v2388_v6 = vsub.s32 2, %v4250_v13 }
 0xa42   : > { %v2188_v37 = vpop.permute.xlu0 %2187 }
 0xa43   : > { %v2201_v45 = vsel %vm924_vm7, %v2002_v31, %v2188_v37  ;;  %v2196_v46 = vpop.permute.xlu1 %2195  ;;  %v2396_v37 = vsub.s32 3, %v4250_v13 }
 0xa44   : > { %v2203_v47 = vsel %vm1547_vm13, %v2201_v45, %v2196_v46  ;;  %v4711_v45 = vld [vmem:[%s4935_s5] sm:$0xff] }
 0xa45   : > { %3427 = vmatprep.mubr.msk.f32.mxu1 %vm643_vm3, %v2203_v47  ;;  %v2389_v46 = vrot.slane %v4711_v45, %v2388_v6  ;;  %v2397_v48 = vrot.slane %v4711_v45, %v2396_v37 }
 0xa46   : > { %v2198_v35 = vpop.permute.xlu0 %2197 }
 0xa47   : > { %v2204_v17 = vsel %vm1547_vm13, %v2202_v21, %v2198_v35 }
 0xa48   : > { %3428 = vmatmul.mubr.msk.f32.gmra.mrb[10].mxu1 %vm643_vm3, %v2204_v17 }
 0xa80   : > { %v2339_v60 = vpop.xlane.xlu0 %2338 }
 0xa81   : > { %v2347_v24 = vmul.f32 0.020833334, %v2339_v60  ;;  %v2590_v60 = vld [vmem:[%s4939_s9 + $0x18] sm:$0xff] }
 0xa82   : > { %v2336_v29 = vpop.xlane.xlu1 %2335 }
 0xa83   : > { %v2346_v22 = vmul.f32 0.020833334, %v2336_v29  ;;  %v2351_v63 = vsub.f32 %v2331_v26, %v2347_v24  ;;  %v3655_v29 = vpack.c.bf16 %v2590_v60, %v2589_v25  ;;  %v2591_v24 = vld [vmem:[%s4939_s9 + $0x20] sm:$0xff] }
 0xa85   : > { %v2350_v8 = vsub.f32 %v2330_v42, %v2346_v22  ;;  %v2355_v11 = vmul.f32 %v2351_v63, %v2351_v63  ;;  %3657 = vmatprep.subr.msk.bf16.mxu1 %vm3650_vm15, %v3655_v29  ;;  %v2592_v22 = vld [vmem:[%s4939_s9 + $0x28] sm:$0xff] }
 0xa86   : > { %3660 = vmatpush3.bf16.xpose.msk.msra.mxu1 %vm3650_vm15, %v3655_v29 }
 0xa87   : > { %v2354_v2 = vmul.f32 %v2350_v8, %v2350_v8  ;;  %v2361_v61 = vsel %vm643_vm3, %v2355_v11, 0.0 }
 0xa89   : > { %v2358_v12 = vsel %vm643_vm3, %v2354_v2, 0.0 }
 0xb1b   : > { %v3429_v62 = vpop.f32.mrb[10].mxu1 }
 0xb1c   : > { %v2327_v58 = vadd.f32 %v3429_v62, %v2214_v38  ;;  %v2321_v0 = vpop.f32.mrb[11].mxu1  ;;  %v3661_v62 = vpack.c.bf16 %v2592_v22, %v2591_v24 }
 0xb1d   : > { %v2322_v9 = vadd.f32 %v2321_v0, %v2214_v38 }
 0xb1e   : > { %v2333_v49 = vadd.f32 %v2327_v58, %v4361_v57  ;;  %v2408_v57 = vld [vmem:[%s4938_s8 + $0x30] sm:$0xff]  ;;  %3663 = vmatprep.subr.msk.bf16.mxu1 %vm3650_vm15, %v3661_v62 }
 0xb1f   : > { %v2332_v50 = vadd.f32 %v2322_v9, %v4354_v55  ;;  %v2409_v55 = vld [vmem:[%s4938_s8 + $0x38] sm:$0xff]  ;;  %3666 = vmatpush3.bf16.xpose.msk.msra.mxu1 %vm3650_vm15, %v3661_v62 }
 0xb20   : > { %v2343_v33 = vsel %vm643_vm3, %v2333_v49, 0.0  ;;  %v3631_v14 = vpack.c.bf16 %v2409_v55, %v2408_v57  ;;  %3478 = vmatprep.subr.mxu1 %v3976_v15  ;;  %v4757_v55 = vld [vmem:[%s4935_s5 + $0x10] sm:$0x7] }
 0xb21   : > { %2344 = vadd.xlane.f32.xlu1 %v2343_v33  ;;  %v2340_v1 = vsel %vm643_vm3, %v2332_v50, 0.0 }
 0xb22   : > { %2341 = vadd.xlane.f32.xlu0 %v2340_v1  ;;  %3633 = vmatprep.subr.msk.bf16.mxu0 %vm4175_vm4, %v3631_v14 }
 0xb23   : > { %3636 = vmatpush3.bf16.xpose.msk.msra.mxu0 %vm4175_vm4, %v3631_v14  ;;  %v2417_v14 = vrot.slane %v4757_v55, %v4254_v19 }
 0xb24   : > { %3639 = vmatprep.subr.msk.bf16.mxu0 %vm4175_vm4, %v3637_v30 }
 0xb25   : > { %2362 = vadd.xlane.f32.xlu1 %v2361_v61 }
 0xb26   : > { %2359 = vadd.xlane.f32.xlu0 %v2358_v12 }
 0xb2b   : > { %3642 = vmatpush3.bf16.xpose.msk.msra.mxu0 %vm4175_vm4, %v3637_v30 }
 0xb2c   : > { %3645 = vmatprep.subr.msk.bf16.mxu0 %vm4175_vm4, %v3643_v7 }
 0xb33   : > { %3648 = vmatpush3.bf16.xpose.msk.msra.mxu0 %vm4175_vm4, %v3643_v7 }
 0xbae   : > { %v2345_v31 = vpop.xlane.xlu1 %2344 }
 0xbaf   : > { %v2349_v34 = vmul.f32 0.020833334, %v2345_v31  ;;  %v2342_v20 = vpop.xlane.xlu0 %2341 }
 0xbb0   : > { %v2348_v39 = vmul.f32 0.020833334, %v2342_v20 }
 0xbb1   : > { %v2353_v44 = vsub.f32 %v2333_v49, %v2349_v34 }
 0xbb2   : > { %v2352_v36 = vsub.f32 %v2332_v50, %v2348_v39  ;;  %v2363_v4 = vpop.xlane.xlu1 %2362 }
 0xbb3   : > { %v2371_v3 = vmul.f32 0.020833334, %v2363_v4  ;;  %v2360_v38 = vpop.xlane.xlu0 %2359  ;;  %v2357_v40 = vmul.f32 %v2353_v44, %v2353_v44 }
 0xbb4   : > { %v2370_v41 = vmul.f32 0.020833334, %v2360_v38  ;;  %v2356_v26 = vmul.f32 %v2352_v36, %v2352_v36 }
 0xbb5   : > { %v2375_v42 = vadd.f32 1e-12, %v2371_v3  ;;  %v2367_v43 = vsel %vm643_vm3, %v2357_v40, 0.0 }
 0xbb6   : > { %v2374_v52 = vadd.f32 1e-12, %v2370_v41  ;;  %2368 = vadd.xlane.f32.xlu1 %v2367_v43  ;;  %v2364_v32 = vsel %vm643_vm3, %v2356_v26, 0.0 }
 0xbb7   : > { %3850 = vrsqrt.f32 %v2375_v42  ;;  %2365 = vadd.xlane.f32.xlu0 %v2364_v32 }
 0xbb8   : > { %3852 = vrsqrt.f32 %v2374_v52 }
 0xbc1   : > { %v3851_v47 = vpop.eup %3850 }
 0xbc2   : > { %v3853_v21 = vpop.eup %3852  ;;  %v2383_v35 = vmul.f32 %v3851_v47, %v2351_v63 }
 0xbc3   : > { %v2382_v17 = vmul.f32 %v3853_v21, %v2350_v8 }
 0xbc4   : > { %v2391_v53 = vmul.f32 %v2389_v46, %v2383_v35 }
 0xbc5   : > { %v2390_v51 = vmul.f32 %v2389_v46, %v2382_v17 }
 0xbc6   : > { %v4719_v28 = vadd.f32 %v2397_v48, %v2391_v53 }
 0xbc7   : > { %v4717_v5 = vadd.f32 %v2397_v48, %v2390_v51 }
 0xbc9   : > { %3454 = vmatprep.mubr.msk.f32.mxu0 %vm643_vm3, %v4717_v5 }
 0xbca   : > { %3455 = vmatmul.mubr.msk.f32.vlgmr.msra.gmra.mrb[28].mxu0 %vm643_vm3, %v4719_v28 }
 0xc43   : > { %v2369_v63 = vpop.xlane.xlu1 %2368 }
 0xc44   : > { %v2373_v58 = vmul.f32 0.020833334, %v2369_v63  ;;  %v2366_v0 = vpop.xlane.xlu0 %2365 }
 0xc45   : > { %v2372_v8 = vmul.f32 0.020833334, %v2366_v0 }
 0xc46   : > { %v2377_v9 = vadd.f32 1e-12, %v2373_v58 }
 0xc47   : > { %v2376_v49 = vadd.f32 1e-12, %v2372_v8  ;;  %v4768_v8 = vrot.slane %v4757_v55, %v707_v16 }
 0xc48   : > { %3854 = vrsqrt.f32 %v2377_v9 }
 0xc49   : > { %3856 = vrsqrt.f32 %v2376_v49 }
 0xc52   : > { %v3855_v50 = vpop.eup %3854 }
 0xc53   : > { %v3857_v33 = vpop.eup %3856  ;;  %v2385_v11 = vmul.f32 %v3855_v50, %v2353_v44 }
 0xc54   : > { %v2384_v1 = vmul.f32 %v3857_v33, %v2352_v36 }
 0xc55   : > { %v2393_v2 = vmul.f32 %v2389_v46, %v2385_v11 }
 0xc56   : > { %v2392_v61 = vmul.f32 %v2389_v46, %v2384_v1 }
 0xc57   : > { %v4748_v57 = vadd.f32 %v2397_v48, %v2393_v2 }
 0xc58   : > { %v4746_v12 = vadd.f32 %v2397_v48, %v2392_v61 }
 0xc5a   : > { %3457 = vmatprep.mubr.msk.f32.mxu0 %vm643_vm3, %v4746_v12 }
 0xc5b   : > { %3458 = vmatmul.mubr.msk.f32.gmra.mrb[30].mxu0 %vm643_vm3, %v4748_v57 }
 0xc9d   : > { %v3456_v23 = vpop.f32.mrb[28].mxu0 }
 0xc9e   : > { %v2538_v18 = vadd.f32 %v3456_v23, %v2417_v14  ;;  %v2532_v30 = vpop.f32.mrb[29].mxu0 }
 0xc9f   : > { %v2533_v59 = vadd.f32 %v2532_v30, %v2417_v14 }
 0xca0   : > { %v2556_v27 = vmul.f32 0.044715, %v2538_v18  ;;  %v2552_v42 = vmul.f32 0.5, %v2538_v18 }
 0xca1   : > { %v2555_v7 = vmul.f32 0.044715, %v2533_v59  ;;  %v2551_v19 = vmul.f32 0.5, %v2533_v59 }
 0xca2   : > { %v2560_v31 = vmul.f32 %v2556_v27, %v2538_v18 }
 0xca3   : > { %v2559_v34 = vmul.f32 %v2555_v7, %v2533_v59 }
 0xca4   : > { %v2564_v20 = vmul.f32 %v2560_v31, %v2538_v18 }
 0xca5   : > { %v2563_v39 = vmul.f32 %v2559_v34, %v2533_v59 }
 0xca6   : > { %v2568_v44 = vadd.f32 %v2564_v20, %v2538_v18 }
 0xca7   : > { %v2567_v36 = vadd.f32 %v2563_v39, %v2533_v59 }
 0xca8   : > { %v2572_v4 = vmul.f32 0.7978846, %v2568_v44 }
 0xca9   : > { %v2571_v3 = vmul.f32 0.7978846, %v2567_v36 }
 0xcaa   : > { %3858 = vtanh.f32 %v2572_v4 }
 0xcab   : > { %3860 = vtanh.f32 %v2571_v3 }
 0xcb4   : > { %v3859_v38 = vpop.eup %3858 }
 0xcb5   : > { %v3861_v40 = vpop.eup %3860  ;;  %v2580_v41 = vadd.f32 1.0, %v3859_v38 }
 0xcb6   : > { %v2579_v26 = vadd.f32 1.0, %v3861_v40 }
 0xcb7   : > { %v2584_v52 = vmul.f32 %v2580_v41, %v2552_v42  ;;  %v2779_v42 = vsub.s32 5, %v4250_v13 }
 0xcb8   : > { %v2583_v43 = vmul.f32 %v2579_v26, %v2551_v19  ;;  %v2771_v19 = vsub.s32 4, %v4250_v13 }
 0xcba   : > { %3472 = vmatprep.mubr.msk.f32.mxu1 %vm2597_vm14, %v2583_v43  ;;  %v4787_v43 = vrot.slane %v4711_v45, %v2771_v19 }
 0xcbb   : > { %3473 = vmatmul.mubr.msk.f32.vlgmr.msra.gmra.mrb[12].mxu1 %vm2597_vm14, %v2584_v52 }
 0xd2e   : > { %v3459_v32 = vpop.f32.mrb[30].mxu0 }
 0xd2f   : > { %v2548_v37 = vadd.f32 %v3459_v32, %v2417_v14  ;;  %v2542_v46 = vpop.f32.mrb[31].mxu0 }
 0xd30   : > { %v2543_v47 = vadd.f32 %v2542_v46, %v2417_v14 }
 0xd31   : > { %v2558_v21 = vmul.f32 0.044715, %v2548_v37  ;;  %v2554_v63 = vmul.f32 0.5, %v2548_v37 }
 0xd32   : > { %v2557_v35 = vmul.f32 0.044715, %v2543_v47  ;;  %v2553_v22 = vmul.f32 0.5, %v2543_v47 }
 0xd33   : > { %v2562_v17 = vmul.f32 %v2558_v21, %v2548_v37 }
 0xd34   : > { %v2561_v48 = vmul.f32 %v2557_v35, %v2543_v47  ;;  %v2798_v35 = vld [vmem:[%s4940_s10] sm:$0x3] }
 0xd35   : > { %v2566_v53 = vmul.f32 %v2562_v17, %v2548_v37  ;;  %3479 = vmatpush3.xpose.msk.msra.mxu1 %vm643_vm3, %v2798_v35 }
 0xd36   : > { %v2565_v51 = vmul.f32 %v2561_v48, %v2543_v47 }
 0xd37   : > { %v2570_v54 = vadd.f32 %v2566_v53, %v2548_v37  ;;  %v4793_v37 = vrot.slane %v4711_v45, %v2779_v42 }
 0xd38   : > { %v2569_v10 = vadd.f32 %v2565_v51, %v2543_v47 }
 0xd39   : > { %v2574_v56 = vmul.f32 0.7978846, %v2570_v54 }
 0xd3a   : > { %v2573_v25 = vmul.f32 0.7978846, %v2569_v10 }
 0xd3b   : > { %3862 = vtanh.f32 %v2574_v56 }
 0xd3c   : > { %3864 = vtanh.f32 %v2573_v25 }
 0xd45   : > { %v3863_v60 = vpop.eup %3862 }
 0xd46   : > { %v3865_v29 = vpop.eup %3864  ;;  %v2582_v24 = vadd.f32 1.0, %v3863_v60 }
 0xd47   : > { %v2581_v62 = vadd.f32 1.0, %v3865_v29 }
 0xd48   : > { %v2586_v0 = vmul.f32 %v2582_v24, %v2554_v63 }
 0xd49   : > { %v2585_v58 = vmul.f32 %v2581_v62, %v2553_v22 }
 0xd4b   : > { %3475 = vmatprep.mubr.msk.f32.mxu1 %vm2597_vm14, %v2585_v58 }
 0xd4c   : > { %3476 = vmatmul.mubr.msk.f32.gmra.mrb[14].mxu1 %vm2597_vm14, %v2586_v0 }
 0xd4d   : > { %3480 = vmatprep.mubr.msk.f32.mxu1 %vm3983_vm0, %v3976_v15 }
 0xd8e   : > { %v3474_v9 = vpop.f32.mrb[12].mxu1 }
 0xd8f   : > { %v2694_v49 = vpop.f32.mrb[13].mxu1  ;;  %v2700_v16 = vadd.f32 %v3474_v9, %v4768_v8  ;;  %v2802_v9 = vrot.slane %v4757_v55, %v2388_v6 }
 0xd90   : > { %v2695_v50 = vadd.f32 %v2694_v49, %v4768_v8 }
 0xd91   : > { %v2714_v7 = vadd.f32 %v2700_v16, %v4719_v28 }
 0xd92   : > { %v2713_v33 = vadd.f32 %v2695_v50, %v4717_v5 }
 0xd93   : > { %v2720_v31 = vsel %vm643_vm3, %v2714_v7, 0.0 }
 0xd94   : > { %v2717_v11 = vsel %vm643_vm3, %v2713_v33, 0.0 }
 0xd95   : > { %2718 = vadd.xlane.f32.xlu1 %v2717_v11 }
 0xe1f   : > { %v4773_v1 = vpop.f32.mrb[14].mxu1 }
 0xe20   : > { %v2704_v2 = vpop.f32.mrb[15].mxu1  ;;  %v2710_v49 = vadd.f32 %v4773_v1, %v4768_v8 }
 0xe21   : > { %v2705_v61 = vadd.f32 %v2704_v2, %v4768_v8 }
 0xe22   : > { %v2719_v14 = vpop.xlane.xlu1 %2718 }
 0xe23   : > { %v2729_v23 = vmul.f32 0.020833334, %v2719_v14  ;;  %v2715_v18 = vadd.f32 %v2705_v61, %v4746_v12  ;;  %v2716_v61 = vadd.f32 %v2710_v49, %v4748_v57 }
 0xe25   : > { %v2733_v30 = vsub.f32 %v2713_v33, %v2729_v23  ;;  %v2723_v59 = vsel %vm643_vm3, %v2715_v18, 0.0  ;;  %v2726_v13 = vsel %vm643_vm3, %v2716_v61, 0.0  ;;  %v2892_v23 = vld [vmem:[%s496_s24] sm:$0x3]  ;;  %s2907_s24 = scalar_lea.sflag [#allocation5], %s4790_s20 }
 0xe26   : > { %2724 = vadd.xlane.f32.xlu0 %v2723_v59 }
 0xe27   : > { %v2737_v27 = vmul.f32 %v2733_v30, %v2733_v30 }
 0xe29   : > { %v2741_v5 = vsel %vm643_vm3, %v2737_v27, 0.0 }
 0xe2a   : > { %2742 = vadd.xlane.f32.xlu1 %v2741_v5 }
 0xe2e   : > { %2721 = vadd.xlane.f32.xlu1 %v2720_v31 }
 0xeb3   : > { %v2725_v34 = vpop.xlane.xlu0 %2724 }
 0xeb4   : > { %v2731_v20 = vmul.f32 0.020833334, %v2725_v34 }
 0xeb6   : > { %v2735_v39 = vsub.f32 %v2715_v18, %v2731_v20 }
 0xeb7   : > { %v2743_v44 = vpop.xlane.xlu1 %2742 }
 0xeb8   : > { %v2753_v12 = vmul.f32 0.020833334, %v2743_v44  ;;  %v2739_v36 = vmul.f32 %v2735_v39, %v2735_v39 }
 0xeba   : > { %v2757_v4 = vadd.f32 1e-12, %v2753_v12  ;;  %v2747_v3 = vsel %vm643_vm3, %v2739_v36, 0.0 }
 0xebb   : > { %2748 = vadd.xlane.f32.xlu0 %v2747_v3  ;;  %v2722_v38 = vpop.xlane.xlu1 %2721 }
 0xebc   : > { %3866 = vrsqrt.f32 %v2757_v4  ;;  %v2730_v40 = vmul.f32 0.020833334, %v2722_v38 }
 0xebe   : > { %v2734_v41 = vsub.f32 %v2714_v7, %v2730_v40 }
 0xec0   : > { %v2738_v28 = vmul.f32 %v2734_v41, %v2734_v41 }
 0xec2   : > { %v2744_v26 = vsel %vm643_vm3, %v2738_v28, 0.0 }
 0xec3   : > { %2745 = vadd.xlane.f32.xlu1 %v2744_v26 }
 0xec6   : > { %v3867_v52 = vpop.eup %3866 }
 0xec7   : > { %v2765_v32 = vmul.f32 %v3867_v52, %v2733_v30 }
 0xec9   : > { %v2773_v46 = vmul.f32 %v4787_v43, %v2765_v32 }
 0xecb   : > { %v2781_v47 = vadd.f32 %v4793_v37, %v2773_v46 }
 0xecd   : > { %v2785_v21 = vsel %vm643_vm3, %v2781_v47, 0.0 }
 0xece   : > { %2789 = vst [vmem:[%s4799_s23] sm:$0xff] %v2785_v21 }
 0xf48   : > { %v2749_v45 = vpop.xlane.xlu0 %2748 }
 0xf49   : > { %v2755_v17 = vmul.f32 0.020833334, %v2749_v45 }
 0xf4b   : > { %v2759_v48 = vadd.f32 1e-12, %v2755_v17 }
 0xf4d   : > { %3868 = vrsqrt.f32 %v2759_v48 }
 0xf50   : > { %v2746_v53 = vpop.xlane.xlu1 %2745 }
 0xf51   : > { %v2754_v51 = vmul.f32 0.020833334, %v2746_v53 }
 0xf53   : > { %v2758_v54 = vadd.f32 1e-12, %v2754_v51 }
 0xf55   : > { %3870 = vrsqrt.f32 %v2758_v54 }
 0xf57   : > { %v3869_v10 = vpop.eup %3868 }
 0xf58   : > { %v2767_v56 = vmul.f32 %v3869_v10, %v2735_v39 }
 0xf5a   : > { %v2775_v25 = vmul.f32 %v4787_v43, %v2767_v56 }
 0xf5c   : > { %v2783_v60 = vadd.f32 %v4793_v37, %v2775_v25 }
 0xf5e   : > { %v2787_v15 = vsel %vm643_vm3, %v2783_v60, 0.0  ;;  %v2794_v29 = vrot.slane %v2783_v60, 7 }
 0xf5f   : > { %v3871_v24 = vpop.eup %3870  ;;  %2791 = vst [vmem:[%s4799_s23 + $0x10] sm:$0xff] %v2787_v15 }
 0xf60   : > { %v2766_v22 = vmul.f32 %v3871_v24, %v2734_v41  ;;  %v2797_v62 = vsel %vm2796_vm1, %v2781_v47, %v2794_v29 }
 0xf61   : > { %3481 = vmatmul.mubr.msk.f32.vlgmr.msra.gmra.mrb[16].mxu1 %vm643_vm3, %v2797_v62 }
 0xf62   : > { %v2774_v63 = vmul.f32 %v4787_v43, %v2766_v22 }
 0xf64   : > { %v2782_v58 = vadd.f32 %v4793_v37, %v2774_v63 }
 0xf66   : > { %v2786_v0 = vsel %vm643_vm3, %v2782_v58, 0.0 }
 0xf67   : > { %2790 = vst [vmem:[%s4799_s23 + $0x8] sm:$0xff] %v2786_v0 }
0x1034   : > { %v2875_v50 = vpop.f32.mrb[16].mxu1 }
0x1035   : > { %v2876_v33 = vadd.f32 %v2875_v50, %v2802_v9  ;;  %v3482_v11 = vpop.f32.mrb[17].mxu1 }
0x1037   : > { %v2880_v2 = vsel %vm2879_vm2, %v2876_v33, -inf  ;;  %2898 = vst.msk [vmem:[%s4824_s17] sm:$0x3] %vm2879_vm2, %v2876_v33  ;;  %v2893_v30 = vmul.f32 %v2892_v23, %v2876_v33 }
0x1038   : > { %2881 = vmax.xlane.f32.xlu0 %v2880_v2 }
0x1039   : > { %v2894_v27 = vsel %vm2879_vm2, %v2893_v30, 0.0 }
0x103c   : > { %2727 = vadd.xlane.f32.xlu0 %v2726_v13 }
0x10c5   : > { %v4833_v6 = vpop.xlane.xlu0 %2881 }
0x10c6   : > { %v2883_v55 = vsub.f32 %v2876_v33, %v4833_v6 }
0x10c8   : > { %v2884_v57 = vmul.f32 1.442695, %v2883_v55 }
0x10c9   : > { %v2728_v8 = vpop.xlane.xlu0 %2727 }
0x10ca   : > { %3872 = vpow2.f32 %v2884_v57  ;;  %v2732_v1 = vmul.f32 0.020833334, %v2728_v8 }
0x10cc   : > { %v2736_v14 = vsub.f32 %v2716_v61, %v2732_v1 }
0x10ce   : > { %v2740_v18 = vmul.f32 %v2736_v14, %v2736_v14 }
0x10d0   : > { %v2750_v16 = vsel %vm643_vm3, %v2740_v18, 0.0 }
0x10d1   : > { %2751 = vadd.xlane.f32.xlu0 %v2750_v16 }
0x10d4   : > { %v3873_v59 = vpop.eup %3872 }
0x10d5   : > { %2895 = vadd.xlane.f32.xlu0 %v2894_v27  ;;  %v2886_v5 = vsel %vm2879_vm2, %v3873_v59, 0.0 }
0x10d6   : > { %2887 = vadd.xlane.f32.xlu1 %v2886_v5 }
0x10d7   : > { %3892 = shalt.err (!%p3889_p4)
}
0x10d8   : > { %s3893_s17 = scalar_lea.hbm %s4850_s21, 32  ;;  %s3897_s2 = scalar_lea.hbm %s4942_s12, 64 }
0x10d9   : > { %p3894_p7 = scmp.ne.s32.totalorder %s4850_s21, %s3893_s17  ;;  %p3898_p10 = scmp.lt.u32.totalorder %s4850_s21, %s4942_s12 }
0x10da   : > { %p3899_p11 = scmp.lt.u32.totalorder %s3897_s2, %s3893_s17  ;;  %p3901_p13 = scmp.lt.u32.totalorder %s3893_s17, %s4850_s21 }
0x10db   : > { %p3895_p8 = pnand %p3894_p7, %p4096_p5 }
0x10dc   : > { %p3900_p12 = por %p3899_p11, %p3898_p10 }
0x10dd   : > { %p3896_p9 = pneg %p3895_p8 }
0x10de   : > { %p3902_p0 = por %p3901_p13, %p3900_p12 }
0x10e0   : > { %p3903_p1 = pnand %p3902_p0, %p3896_p9 }
0x10e2   : > { %3906 = shalt.err (!%p3903_p1)
}
0x10e3   : > { %3668 = dma.vmem_to_hbm [thread:$0]  (%p4096_p5), %s2942_s16, 32, %s4850_s21, %s2907_s24   ;;  %vm2899_vm4 = vcmask 1024  }
0x10e4   : > { %s3207_s1 = sshll.u32 %s4079_s29, 9  ;;  %s2925_s4 = sshll.u32 %s4799_s23, 4  ;;  %s4885_s4 = int_to_ptr.vmem [resolvable:$true] %s2925_s4 }
0x10e5   : > { %s4966_s17 = sshll.u32 %s4831_s15, 1  ;;  %s4883_s2 = scalar_lea.hbm %s4941_s11, %s3207_s1 }
0x10e6   : > { %s501_s16 = scalar_lea.vmem %s4943_s13, %s4966_s17  ;;  %s2902_s29 = scalar_lea.sflag [#allocation3], %s4790_s20 }
0x10e7   : > { %s3907_s15 = scalar_lea.vmem %s4885_s4, 512  ;;  %s3985_s0 = smov [#allocation2]  }
0x10e8   : > { %p3908_p2 = scmp.ne.s32.totalorder %s4885_s4, %s3907_s15  ;;  %s3911_s3 = sshll.u32 %s3985_s0, 4  ;;  %s3912_s3 = int_to_ptr.vmem [resolvable:$false] %s3911_s3 }
0x10e9   : > { %s3913_s1 = scalar_lea.vmem %s3912_s3, 1024  ;;  %p3914_p7 = scmp.lt.s32.totalorder %s4885_s4, %s3912_s3 }
0x10ea   : > { %p3909_p3 = pnand %p3908_p2, %p4096_p5  ;;  %p3915_p8 = scmp.lt.s32.totalorder %s3913_s1, %s3907_s15 }
0x10ec   : > { %p3910_p4 = pneg %p3909_p3  ;;  %p3916_p9 = por %p3915_p8, %p3914_p7 }
0x10ee   : > { %p3917_p10 = pnand %p3916_p9, %p3910_p4 }
0x115e   : > { %v2752_v7 = vpop.xlane.xlu0 %2751 }
0x115f   : > { %v2756_v31 = vmul.f32 0.020833334, %v2752_v7 }
0x1161   : > { %v2760_v34 = vadd.f32 1e-12, %v2756_v31 }
0x1162   : > { %v2896_v40 = vpop.xlane.xlu0 %2895 }
0x1163   : > { %3874 = vrsqrt.f32 %v2760_v34  ;;  %v2888_v20 = vpop.xlane.xlu1 %2887 }
0x1164   : > { %3876 = vlog2.f32 %v2888_v20 }
0x116d   : > { %v3875_v39 = vpop.eup %3874 }
0x116e   : > { %v3877_v44 = vpop.eup %3876  ;;  %v2768_v12 = vmul.f32 %v3875_v39, %v2736_v14 }
0x116f   : > { %v2890_v36 = vmul.f32 0.6931472, %v3877_v44 }
0x1170   : > { %v2776_v4 = vmul.f32 %v4787_v43, %v2768_v12 }
0x1171   : > { %v2891_v3 = vadd.f32 %v2890_v36, %v4833_v6 }
0x1172   : > { %v2784_v38 = vadd.f32 %v4793_v37, %v2776_v4 }
0x1173   : > { %v2897_v41 = vsub.f32 %v2891_v3, %v2896_v40 }
0x1174   : > { %v2788_v28 = vsel %vm643_vm3, %v2784_v38, 0.0 }
0x1175   : > { %2792 = vst [vmem:[%s4799_s23 + $0x18] sm:$0xff] %v2788_v28  ;;  %2900 = vst.msk [vmem:[%s501_s16] sm:$0x3] %vm2899_vm4, %v2897_v41 }
0x1176   : > { %3920 = shalt.err (!%p3917_p10)
}
0x1177   : > { %s3921_s23 = scalar_lea.hbm %s4883_s2, 512  ;;  %s3925_s21 = scalar_lea.hbm %s4941_s11, 1024 }
0x1178   : > { %p3922_p11 = scmp.ne.s32.totalorder %s4883_s2, %s3921_s23  ;;  %p3926_p0 = scmp.lt.u32.totalorder %s4883_s2, %s4941_s11 }
0x1179   : > { %p3927_p1 = scmp.lt.u32.totalorder %s3925_s21, %s3921_s23  ;;  %p3929_p3 = scmp.lt.u32.totalorder %s3921_s23, %s4883_s2 }
0x117a   : > { %p3923_p12 = pnand %p3922_p11, %p4096_p5 }
0x117b   : > { %p3928_p2 = por %p3927_p1, %p3926_p0 }
0x117c   : > { %p3924_p13 = pneg %p3923_p12 }
0x117d   : > { %p3930_p4 = por %p3929_p3, %p3928_p2 }
0x117f   : > { %p3931_p7 = pnand %p3930_p4, %p3924_p13 }
0x1181   : > { %3934 = shalt.err (!%p3931_p7)
}
0x1182   : > { %s3986_s22 = smov 128   ;;  %s3987_s15 = smov 8  }
0x1183   : > { %3667 = dma.vmem_to_hbm [thread:$0]  (%p4096_p5), %s4885_s4, 512, %s4883_s2, %s2902_s29, %s3986_s22, %s3986_s22, %s3987_s15  }
0x1184 PF: > { %p3678_p8 = scmp.ge.s32.totalorder %s3973_s28, 2  ;;  %s2956_s0 = sand.u32 1, %s3961_s25  }
0x1185   : > { %s2957_s3 = scalar_lea.sflag [#allocation3], %s2956_s0 }
0x1186   : > { %p3672_p9 = pnand %p3678_p8, %p4100_p6 }
0x1188   : > { %3952 = dma.done.wait (!%p3672_p9), %s2957_s3, 512  }
0x1189   : > { %3954 = vsyncadd (!%p3672_p9), %s2957_s3, 4294966784  ;;  %s2966_s1 = scalar_lea.sflag [#allocation5], %s2956_s0 }
0x118a   : > { %3956 = dma.done.wait (!%p3672_p9), %s2966_s1, 32  }
0x118b   : > { %3958 = vsyncadd (!%p3672_p9), %s2966_s1, 4294967264  ;;  %s4967_s18 = sld [smem:[#allocation8_spill]]  ;;  %p27_p5 = scmp.ge.s32.totalorder %s4083_s14, 4  }
0x118c   : > { %s4968_s25 = smov %s3965_s26  ;;  %s4969_s26 = smov %s3969_s27 }
0x118d   : > { %s4971_s28 = smov %s4083_s14  ;;  %29 = sbr.rel (!%p27_p5) target bundleno = 11 (0xb), region = 135 }
0x1191   : > { %s4970_s27 = smov %s4967_s18 }
0x1194   :  { %2978 = vsyncpa [#allocation3], 1 }
0x1195   :  { %2980 = vsyncpa [#allocation3 + $0x1], 1 }
0x1196   :  { %2981 = vsyncpa [#allocation5], 1 }
0x1197   :  { %2983 = vsyncpa [#allocation5 + $0x1], 1 }

</bundles_post_ra>
